<compile_context>
chip_gen: v5e
topology: v5e:2x2
jax: 0.10.0
libtpu: 0.0.40
codegen_flags: <defaults>
</compile_context>

<pallas_src>
import functools

import jax
import jax.numpy as jnp
from jax import lax
from jax.experimental import pallas as pl
from jax.experimental.pallas import tpu as pltpu


# ------------------------------ fused kernel --------------------------------

def text_encoder_kernel(x_ref, lens2_ref, wih_ref, bgx_ref, bhn_ref, whh_ref,
                        *rest, num_mlp_layers, batch, t_max, hidden, eps=1e-5):
    """Fused forward pass.

    Inputs:
      x_ref     (T*BP, Dsum)  f32  time-major, [x_tac | x_bert] along lanes
      lens2_ref (BP, 2H)      i32  valid length broadcast per GRU lane block
      wih_ref   (Dsum, 6H)    f32  block-diag, gate-stacked W_ih^T
                                   cols = [r_tac, r_bert, z_tac, z_bert, n_tac, n_bert]
      bgx_ref   (1, 6H)       f32  b_ih (+ b_hh for r,z gates) in same layout
      bhn_ref   (1, 2H)       f32  b_hn per GRU (added inside r * (.))
      whh_ref   (2H, 6H)      f32  block-diag, gate-stacked W_hh^T
      then per MLP layer i:   w_i^T (F_in, F_out), gb_i (2, F_out) = [gamma; beta]
    Outputs:
      out_ref   (BP, F_last)
    Scratch:
      gx_ref    (T*BP, 6H)    VMEM  hoisted input projection
    """
    H2 = 2 * hidden
    gx_ref = rest[-1]                        # VMEM scratch
    out_ref = rest[-2]
    mlp_refs = rest[:-2]

    lens2 = lens2_ref[...]                   # (BP, 2H) i32
    BP = lens2.shape[0]

    # --- hoisted input projection: both GRUs, all gates, ONE MXU matmul -----
    gx_ref[...] = (jnp.dot(x_ref[...], wih_ref[...],
                           preferred_element_type=jnp.float32) + bgx_ref[...])

    whh = whh_ref[...]                       # (2H, 6H)
    bhn = bhn_ref[...]                       # (1, 2H)

    # --- stacked GRU recurrence: ONE matmul per time step --------------------
    h = jnp.zeros((BP, H2), jnp.float32)     # [h_tac | h_bert]
    for t in range(t_max):                   # static unroll; T is small here
        gxt = gx_ref[pl.ds(t * BP, BP), :]   # (BP, 6H), 8-sublane aligned rows
        gh = jnp.dot(h, whh, preferred_element_type=jnp.float32)   # (BP, 6H)
        r = jax.nn.sigmoid(gxt[:, :H2] + gh[:, :H2])
        z = jax.nn.sigmoid(gxt[:, H2:2 * H2] + gh[:, H2:2 * H2])
        n = jnp.tanh(gxt[:, 2 * H2:] + r * (gh[:, 2 * H2:] + bhn))
        h_new = (1.0 - z) * n + z * h
        # emulate pack_padded_sequence: freeze h once t >= length (per GRU)
        h = jnp.where(lens2 > t, h_new, h)

    # --- MLP on full BP rows (tile aligned); pad rows masked out of BN stats
    row_mask = (lax.broadcasted_iota(jnp.int32, (BP, 1), 0)
                < batch).astype(jnp.float32)
    inv_b = 1.0 / batch
    y = h                                    # (BP, 2H) == concat(h_tac, h_bert)
    for i in range(num_mlp_layers):
        w = mlp_refs[2 * i][...]             # (F_in, F_out)
        gb = mlp_refs[2 * i + 1][...]        # (2, F_out): [gamma; beta]
        # Linear bias omitted: exactly cancelled by train-mode BN mean subtraction.
        y = jnp.dot(y, w, preferred_element_type=jnp.float32)
        mean = jnp.sum(y * row_mask, axis=0, keepdims=True) * inv_b
        d = (y - mean) * row_mask            # pad rows excluded from variance
        var = jnp.sum(d * d, axis=0, keepdims=True) * inv_b
        y = (y - mean) * lax.rsqrt(var + eps) * gb[0:1] + gb[1:2]
        if i < num_mlp_layers - 1:
            y = jnp.maximum(y, 0.0)
    out_ref[...] = jnp.tanh(y)


# ------------------------------ Python wrapper -------------------------------

_VMEM = lambda: pl.BlockSpec(memory_space=pltpu.MemorySpace.VMEM)


def _pack_time_major(x_btd, t_max, bp):
    """(B,T,D) batch-first -> time-major (t_max, bp, D), zero padded."""
    B, T, _ = x_btd.shape
    x = jnp.transpose(x_btd, (1, 0, 2)).astype(jnp.float32)
    return jnp.pad(x, ((0, t_max - T), (0, bp - B), (0, 0)))


@jax.jit
def text_encoder_forward(params, inputs, input_lens, bert_outs, bert_lens):
    B, T_tac, D_t = inputs.shape
    _, T_bert, D_b = bert_outs.shape
    w_ih_t, w_hh_t, b_ih_t, b_hh_t = params["tac_gru"]
    w_ih_b, w_hh_b, b_ih_b, b_hh_b = params["bert_gru"]
    H = w_hh_t.shape[1]                            # W_hh: (3H, H)
    H2 = 2 * H
    n_layers = len(params["linears"])
    gst_dim = params["linears"][-1][0].shape[0]
    BP = -(-B // 8) * 8                            # pad batch to sublane group
    T_max = max(T_tac, T_bert)

    # combined time-major input: [x_tac | x_bert] along feature lanes
    xt = _pack_time_major(inputs, T_max, BP)
    xb = _pack_time_major(bert_outs, T_max, BP)
    x_comb = jnp.concatenate([xt, xb], axis=-1).reshape(T_max * BP, D_t + D_b)

    # per-GRU lengths broadcast to the stacked-state lane layout
    lt = jnp.zeros((BP,), jnp.int32).at[:B].set(input_lens.astype(jnp.int32))
    lb = jnp.zeros((BP,), jnp.int32).at[:B].set(bert_lens.astype(jnp.int32))
    lens2 = jnp.concatenate(
        [jnp.broadcast_to(lt[:, None], (BP, H)),
         jnp.broadcast_to(lb[:, None], (BP, H))], axis=1)          # (BP, 2H)

    # block-diagonal, gate-stacked weights:
    #   cols = [r_tac, r_bert, z_tac, z_bert, n_tac, n_bert], each H wide
    wih_comb = jnp.zeros((D_t + D_b, 6 * H), jnp.float32)
    whh_comb = jnp.zeros((H2, 6 * H), jnp.float32)
    bgx = jnp.zeros((1, 6 * H), jnp.float32)
    for g in range(3):                              # gate order: r, z, n
        c0 = 2 * g * H
        wih_comb = wih_comb.at[:D_t, c0:c0 + H].set(w_ih_t[g * H:(g + 1) * H].T)
        wih_comb = wih_comb.at[D_t:, c0 + H:c0 + 2 * H].set(
            w_ih_b[g * H:(g + 1) * H].T)
        whh_comb = whh_comb.at[:H, c0:c0 + H].set(w_hh_t[g * H:(g + 1) * H].T)
        whh_comb = whh_comb.at[H:, c0 + H:c0 + 2 * H].set(
            w_hh_b[g * H:(g + 1) * H].T)
        bg_t = b_ih_t[g * H:(g + 1) * H]
        bg_b = b_ih_b[g * H:(g + 1) * H]
        if g < 2:   # r,z: hh bias folds into the hoisted projection bias
            bg_t = bg_t + b_hh_t[g * H:(g + 1) * H]
            bg_b = bg_b + b_hh_b[g * H:(g + 1) * H]
        bgx = bgx.at[0, c0:c0 + H].set(bg_t)
        bgx = bgx.at[0, c0 + H:c0 + 2 * H].set(bg_b)
    bhn = jnp.concatenate(
        [b_hh_t[2 * H:3 * H], b_hh_b[2 * H:3 * H]]).reshape(1, H2)

    args = [x_comb, lens2, wih_comb, bgx, bhn, whh_comb]
    for (w, b, gamma, beta) in params["linears"]:
        # Linear bias `b` intentionally not passed (train-mode BN cancels it).
        args += [w.T.astype(jnp.float32),
                 jnp.stack([gamma, beta]).astype(jnp.float32)]

    kernel = functools.partial(text_encoder_kernel, num_mlp_layers=n_layers,
                               batch=B, t_max=T_max, hidden=H)

    out = pl.pallas_call(
        kernel,
        out_shape=jax.ShapeDtypeStruct((BP, gst_dim), jnp.float32),
        in_specs=[_VMEM()] * len(args),
        out_specs=_VMEM(),
        scratch_shapes=[pltpu.VMEM((T_max * BP, 6 * H), jnp.float32)],
    )(*args)
    return out[:B]


# ------------------------------ Parameter setup ------------------------------

def _uniform(key, shape, scale):
    return jax.random.uniform(key, shape, jnp.float32, -scale, scale)


def init_gru_params(key, input_dim, hidden):
    k1, k2, k3, k4 = jax.random.split(key, 4)
    s = 1.0 / jnp.sqrt(hidden)
    return (_uniform(k1, (3 * hidden, input_dim), s),   # W_ih (gate order r,z,n)
            _uniform(k2, (3 * hidden, hidden), s),      # W_hh
            _uniform(k3, (3 * hidden,), s),             # b_ih
            _uniform(k4, (3 * hidden,), s))             # b_hh


def init_text_encoder_params(key, tacotron_dim, bert_dim, gst_dim,
                             gru_hidden, mlp_num_layers):
    keys = jax.random.split(key, 2 + mlp_num_layers)
    params = {
        "tac_gru": init_gru_params(keys[0], tacotron_dim, gru_hidden),
        "bert_gru": init_gru_params(keys[1], bert_dim, gru_hidden),
        "linears": [],
    }
    filters = [gru_hidden + gru_hidden] + [gst_dim] * mlp_num_layers
    for i in range(mlp_num_layers):
        kw, kb = jax.random.split(keys[2 + i])
        s = 1.0 / jnp.sqrt(filters[i])
        w = _uniform(kw, (filters[i + 1], filters[i]), s)
        b = _uniform(kb, (filters[i + 1],), s)
        gamma = jnp.ones((filters[i + 1],), jnp.float32)    # BatchNorm weight
        beta = jnp.zeros((filters[i + 1],), jnp.float32)    # BatchNorm bias
        params["linears"].append((w, b, gamma, beta))
    return params


# ----------------------------------- Main ------------------------------------

if __name__ == "__main__":
    B = 4
    T_TAC, T_BERT = 10, 8
    TACOTRON_DIM, BERT_DIM = 16, 24
    GRU_HIDDEN, GST_DIM = 32, 32
    MLP_NUM_LAYERS = 3

    key = jax.random.PRNGKey(0)
    k_par, k_in, k_bert = jax.random.split(key, 3)

    params = init_text_encoder_params(
        k_par, TACOTRON_DIM, BERT_DIM, GST_DIM, GRU_HIDDEN, MLP_NUM_LAYERS)

    inputs = jax.random.normal(k_in, (B, T_TAC, TACOTRON_DIM), jnp.float32)
    bert_outs = jax.random.normal(k_bert, (B, T_BERT, BERT_DIM), jnp.float32)
    input_lens = jnp.array([10, 7, 5, 3], jnp.int32)
    bert_lens = jnp.array([8, 6, 4, 2], jnp.int32)

    style_emb = text_encoder_forward(params, inputs, input_lens,
                                     bert_outs, bert_lens)
    style_emb = jax.block_until_ready(style_emb)
    assert style_emb.shape == (B, GST_DIM)
    assert bool(jnp.all(jnp.isfinite(style_emb)))
    print("KERNEL_OK")
</pallas_src>

<mosaic_0001>
module attributes {stable_mosaic.version = 11 : i64} {
  func.func @text_encoder_kernel(%arg0: memref<80x40xf32, #tpu.memory_space<vmem>>, %arg1: memref<8x64xi32, #tpu.memory_space<vmem>>, %arg2: memref<40x192xf32, #tpu.memory_space<vmem>>, %arg3: memref<1x192xf32, #tpu.memory_space<vmem>>, %arg4: memref<1x64xf32, #tpu.memory_space<vmem>>, %arg5: memref<64x192xf32, #tpu.memory_space<vmem>>, %arg6: memref<64x32xf32, #tpu.memory_space<vmem>>, %arg7: memref<2x32xf32, #tpu.memory_space<vmem>>, %arg8: memref<32x32xf32, #tpu.memory_space<vmem>>, %arg9: memref<2x32xf32, #tpu.memory_space<vmem>>, %arg10: memref<32x32xf32, #tpu.memory_space<vmem>>, %arg11: memref<2x32xf32, #tpu.memory_space<vmem>>, %arg12: memref<8x32xf32, #tpu.memory_space<vmem>>, %arg13: memref<80x192xf32, #tpu.memory_space<vmem>>) attributes {dimension_semantics = [], scalar_prefetch = 0 : i64, scratch_operands = 1 : i64, tpu.core_type = #tpu.core_type<tc>} {
    %c0 = arith.constant 0 : index
    %c0_0 = arith.constant 0 : index
    %0 = vector.load %arg1[%c0, %c0_0] : memref<8x64xi32, #tpu.memory_space<vmem>>, vector<8x64xi32>
    %c0_1 = arith.constant 0 : index
    %c0_2 = arith.constant 0 : index
    %1 = vector.load %arg0[%c0_1, %c0_2] : memref<80x40xf32, #tpu.memory_space<vmem>>, vector<80x40xf32>
    %c0_3 = arith.constant 0 : index
    %c0_4 = arith.constant 0 : index
    %2 = vector.load %arg2[%c0_3, %c0_4] : memref<40x192xf32, #tpu.memory_space<vmem>>, vector<40x192xf32>
    %cst = arith.constant dense<0.000000e+00> : vector<80x192xf32>
    %3 = tpu.matmul %1, %2, %cst {dimension_numbers = #tpu.dot_dimension_numbers<[1], [0], [0], [1], [0, 0, 1, 1], [], []>} : vector<80x40xf32>, vector<40x192xf32>, vector<80x192xf32> -> vector<80x192xf32>
    %c0_5 = arith.constant 0 : index
    %c0_6 = arith.constant 0 : index
    %4 = vector.load %arg3[%c0_5, %c0_6] : memref<1x192xf32, #tpu.memory_space<vmem>>, vector<1x192xf32>
    %5 = vector.broadcast %4 : vector<1x192xf32> to vector<80x192xf32>
    %6 = arith.addf %3, %5 : vector<80x192xf32>
    %c0_7 = arith.constant 0 : index
    %c0_8 = arith.constant 0 : index
    %7 = vector.load %arg13[%c0_7, %c0_8] : memref<80x192xf32, #tpu.memory_space<vmem>>, vector<80x192xf32>
    tpu.vector_store %arg13[%c0_7, %c0_8], %6 {strides = array<i32>} : memref<80x192xf32, #tpu.memory_space<vmem>>, vector<80x192xf32>,
    %c0_9 = arith.constant 0 : index
    %c0_10 = arith.constant 0 : index
    %8 = vector.load %arg5[%c0_9, %c0_10] : memref<64x192xf32, #tpu.memory_space<vmem>>, vector<64x192xf32>
    %c0_11 = arith.constant 0 : index
    %c0_12 = arith.constant 0 : index
    %9 = vector.load %arg4[%c0_11, %c0_12] : memref<1x64xf32, #tpu.memory_space<vmem>>, vector<1x64xf32>
    %cst_13 = arith.constant 0.000000e+00 : f32
    %10 = vector.broadcast %cst_13 : f32 to vector<8x64xf32>
    %c0_14 = arith.constant 0 : index
    %c0_15 = arith.constant 0 : index
    %11 = vector.load %arg13[%c0_14, %c0_15] : memref<80x192xf32, #tpu.memory_space<vmem>>, vector<8x192xf32>
    %cst_16 = arith.constant dense<0.000000e+00> : vector<8x192xf32>
    %12 = tpu.matmul %10, %8, %cst_16 {dimension_numbers = #tpu.dot_dimension_numbers<[1], [0], [0], [1], [0, 0, 1, 1], [], []>} : vector<8x64xf32>, vector<64x192xf32>, vector<8x192xf32> -> vector<8x192xf32>
    %13 = vector.extract_strided_slice %11 {offsets = [0, 0], sizes = [8, 64], strides = [1, 1]} : vector<8x192xf32> to vector<8x64xf32>
    %14 = vector.extract_strided_slice %12 {offsets = [0, 0], sizes = [8, 64], strides = [1, 1]} : vector<8x192xf32> to vector<8x64xf32>
    %15 = arith.addf %13, %14 : vector<8x64xf32>
    %16 = arith.negf %15 : vector<8x64xf32>
    %17 = math.exp %16 : vector<8x64xf32>
    %cst_17 = arith.constant 1.000000e+00 : f32
    %18 = vector.broadcast %cst_17 : f32 to vector<8x64xf32>
    %19 = arith.addf %18, %17 : vector<8x64xf32>
    %20 = arith.divf %18, %19 : vector<8x64xf32>
    %21 = vector.extract_strided_slice %11 {offsets = [0, 64], sizes = [8, 64], strides = [1, 1]} : vector<8x192xf32> to vector<8x64xf32>
    %22 = vector.extract_strided_slice %12 {offsets = [0, 64], sizes = [8, 64], strides = [1, 1]} : vector<8x192xf32> to vector<8x64xf32>
    %23 = arith.addf %21, %22 : vector<8x64xf32>
    %24 = arith.negf %23 : vector<8x64xf32>
    %25 = math.exp %24 : vector<8x64xf32>
    %cst_18 = arith.constant 1.000000e+00 : f32
    %26 = vector.broadcast %cst_18 : f32 to vector<8x64xf32>
    %27 = arith.addf %26, %25 : vector<8x64xf32>
    %28 = arith.divf %26, %27 : vector<8x64xf32>
    %29 = vector.extract_strided_slice %11 {offsets = [0, 128], sizes = [8, 64], strides = [1, 1]} : vector<8x192xf32> to vector<8x64xf32>
    %30 = vector.extract_strided_slice %12 {offsets = [0, 128], sizes = [8, 64], strides = [1, 1]} : vector<8x192xf32> to vector<8x64xf32>
    %31 = vector.broadcast %9 : vector<1x64xf32> to vector<8x64xf32>
    %32 = arith.addf %30, %31 : vector<8x64xf32>
    %33 = arith.mulf %20, %32 : vector<8x64xf32>
    %34 = arith.addf %29, %33 : vector<8x64xf32>
    %35 = math.tanh %34 : vector<8x64xf32>
    %cst_19 = arith.constant 1.000000e+00 : f32
    %36 = vector.broadcast %cst_19 : f32 to vector<8x64xf32>
    %37 = arith.subf %36, %28 : vector<8x64xf32>
    %38 = arith.mulf %37, %35 : vector<8x64xf32>
    %39 = arith.mulf %28, %10 : vector<8x64xf32>
    %40 = arith.addf %38, %39 : vector<8x64xf32>
    %c0_i32 = arith.constant 0 : i32
    %41 = vector.broadcast %c0_i32 : i32 to vector<8x64xi32>
    %42 = arith.cmpi sgt, %0, %41 : vector<8x64xi32>
    %43 = arith.select %42, %40, %10 : vector<8x64xi1>, vector<8x64xf32>
    %c8 = arith.constant 8 : index
    %c0_20 = arith.constant 0 : index
    %44 = vector.load %arg13[%c8, %c0_20] : memref<80x192xf32, #tpu.memory_space<vmem>>, vector<8x192xf32>
    %cst_21 = arith.constant dense<0.000000e+00> : vector<8x192xf32>
    %45 = tpu.matmul %43, %8, %cst_21 {dimension_numbers = #tpu.dot_dimension_numbers<[1], [0], [0], [1], [0, 0, 1, 1], [], []>} : vector<8x64xf32>, vector<64x192xf32>, vector<8x192xf32> -> vector<8x192xf32>
    %46 = vector.extract_strided_slice %44 {offsets = [0, 0], sizes = [8, 64], strides = [1, 1]} : vector<8x192xf32> to vector<8x64xf32>
    %47 = vector.extract_strided_slice %45 {offsets = [0, 0], sizes = [8, 64], strides = [1, 1]} : vector<8x192xf32> to vector<8x64xf32>
    %48 = arith.addf %46, %47 : vector<8x64xf32>
    %49 = arith.negf %48 : vector<8x64xf32>
    %50 = math.exp %49 : vector<8x64xf32>
    %cst_22 = arith.constant 1.000000e+00 : f32
    %51 = vector.broadcast %cst_22 : f32 to vector<8x64xf32>
    %52 = arith.addf %51, %50 : vector<8x64xf32>
    %53 = arith.divf %51, %52 : vector<8x64xf32>
    %54 = vector.extract_strided_slice %44 {offsets = [0, 64], sizes = [8, 64], strides = [1, 1]} : vector<8x192xf32> to vector<8x64xf32>
    %55 = vector.extract_strided_slice %45 {offsets = [0, 64], sizes = [8, 64], strides = [1, 1]} : vector<8x192xf32> to vector<8x64xf32>
    %56 = arith.addf %54, %55 : vector<8x64xf32>
    %57 = arith.negf %56 : vector<8x64xf32>
    %58 = math.exp %57 : vector<8x64xf32>
    %cst_23 = arith.constant 1.000000e+00 : f32
    %59 = vector.broadcast %cst_23 : f32 to vector<8x64xf32>
    %60 = arith.addf %59, %58 : vector<8x64xf32>
    %61 = arith.divf %59, %60 : vector<8x64xf32>
    %62 = vector.extract_strided_slice %44 {offsets = [0, 128], sizes = [8, 64], strides = [1, 1]} : vector<8x192xf32> to vector<8x64xf32>
    %63 = vector.extract_strided_slice %45 {offsets = [0, 128], sizes = [8, 64], strides = [1, 1]} : vector<8x192xf32> to vector<8x64xf32>
    %64 = vector.broadcast %9 : vector<1x64xf32> to vector<8x64xf32>
    %65 = arith.addf %63, %64 : vector<8x64xf32>
    %66 = arith.mulf %53, %65 : vector<8x64xf32>
    %67 = arith.addf %62, %66 : vector<8x64xf32>
    %68 = math.tanh %67 : vector<8x64xf32>
    %cst_24 = arith.constant 1.000000e+00 : f32
    %69 = vector.broadcast %cst_24 : f32 to vector<8x64xf32>
    %70 = arith.subf %69, %61 : vector<8x64xf32>
    %71 = arith.mulf %70, %68 : vector<8x64xf32>
    %72 = arith.mulf %61, %43 : vector<8x64xf32>
    %73 = arith.addf %71, %72 : vector<8x64xf32>
    %c1_i32 = arith.constant 1 : i32
    %74 = vector.broadcast %c1_i32 : i32 to vector<8x64xi32>
    %75 = arith.cmpi sgt, %0, %74 : vector<8x64xi32>
    %76 = arith.select %75, %73, %43 : vector<8x64xi1>, vector<8x64xf32>
    %c16 = arith.constant 16 : index
    %c0_25 = arith.constant 0 : index
    %77 = vector.load %arg13[%c16, %c0_25] : memref<80x192xf32, #tpu.memory_space<vmem>>, vector<8x192xf32>
    %cst_26 = arith.constant dense<0.000000e+00> : vector<8x192xf32>
    %78 = tpu.matmul %76, %8, %cst_26 {dimension_numbers = #tpu.dot_dimension_numbers<[1], [0], [0], [1], [0, 0, 1, 1], [], []>} : vector<8x64xf32>, vector<64x192xf32>, vector<8x192xf32> -> vector<8x192xf32>
    %79 = vector.extract_strided_slice %77 {offsets = [0, 0], sizes = [8, 64], strides = [1, 1]} : vector<8x192xf32> to vector<8x64xf32>
    %80 = vector.extract_strided_slice %78 {offsets = [0, 0], sizes = [8, 64], strides = [1, 1]} : vector<8x192xf32> to vector<8x64xf32>
    %81 = arith.addf %79, %80 : vector<8x64xf32>
    %82 = arith.negf %81 : vector<8x64xf32>
    %83 = math.exp %82 : vector<8x64xf32>
    %cst_27 = arith.constant 1.000000e+00 : f32
    %84 = vector.broadcast %cst_27 : f32 to vector<8x64xf32>
    %85 = arith.addf %84, %83 : vector<8x64xf32>
    %86 = arith.divf %84, %85 : vector<8x64xf32>
    %87 = vector.extract_strided_slice %77 {offsets = [0, 64], sizes = [8, 64], strides = [1, 1]} : vector<8x192xf32> to vector<8x64xf32>
    %88 = vector.extract_strided_slice %78 {offsets = [0, 64], sizes = [8, 64], strides = [1, 1]} : vector<8x192xf32> to vector<8x64xf32>
    %89 = arith.addf %87, %88 : vector<8x64xf32>
    %90 = arith.negf %89 : vector<8x64xf32>
    %91 = math.exp %90 : vector<8x64xf32>
    %cst_28 = arith.constant 1.000000e+00 : f32
    %92 = vector.broadcast %cst_28 : f32 to vector<8x64xf32>
    %93 = arith.addf %92, %91 : vector<8x64xf32>
    %94 = arith.divf %92, %93 : vector<8x64xf32>
    %95 = vector.extract_strided_slice %77 {offsets = [0, 128], sizes = [8, 64], strides = [1, 1]} : vector<8x192xf32> to vector<8x64xf32>
    %96 = vector.extract_strided_slice %78 {offsets = [0, 128], sizes = [8, 64], strides = [1, 1]} : vector<8x192xf32> to vector<8x64xf32>
    %97 = vector.broadcast %9 : vector<1x64xf32> to vector<8x64xf32>
    %98 = arith.addf %96, %97 : vector<8x64xf32>
    %99 = arith.mulf %86, %98 : vector<8x64xf32>
    %100 = arith.addf %95, %99 : vector<8x64xf32>
    %101 = math.tanh %100 : vector<8x64xf32>
    %cst_29 = arith.constant 1.000000e+00 : f32
    %102 = vector.broadcast %cst_29 : f32 to vector<8x64xf32>
    %103 = arith.subf %102, %94 : vector<8x64xf32>
    %104 = arith.mulf %103, %101 : vector<8x64xf32>
    %105 = arith.mulf %94, %76 : vector<8x64xf32>
    %106 = arith.addf %104, %105 : vector<8x64xf32>
    %c2_i32 = arith.constant 2 : i32
    %107 = vector.broadcast %c2_i32 : i32 to vector<8x64xi32>
    %108 = arith.cmpi sgt, %0, %107 : vector<8x64xi32>
    %109 = arith.select %108, %106, %76 : vector<8x64xi1>, vector<8x64xf32>
    %c24 = arith.constant 24 : index
    %c0_30 = arith.constant 0 : index
    %110 = vector.load %arg13[%c24, %c0_30] : memref<80x192xf32, #tpu.memory_space<vmem>>, vector<8x192xf32>
    %cst_31 = arith.constant dense<0.000000e+00> : vector<8x192xf32>
    %111 = tpu.matmul %109, %8, %cst_31 {dimension_numbers = #tpu.dot_dimension_numbers<[1], [0], [0], [1], [0, 0, 1, 1], [], []>} : vector<8x64xf32>, vector<64x192xf32>, vector<8x192xf32> -> vector<8x192xf32>
    %112 = vector.extract_strided_slice %110 {offsets = [0, 0], sizes = [8, 64], strides = [1, 1]} : vector<8x192xf32> to vector<8x64xf32>
    %113 = vector.extract_strided_slice %111 {offsets = [0, 0], sizes = [8, 64], strides = [1, 1]} : vector<8x192xf32> to vector<8x64xf32>
    %114 = arith.addf %112, %113 : vector<8x64xf32>
    %115 = arith.negf %114 : vector<8x64xf32>
    %116 = math.exp %115 : vector<8x64xf32>
    %cst_32 = arith.constant 1.000000e+00 : f32
    %117 = vector.broadcast %cst_32 : f32 to vector<8x64xf32>
    %118 = arith.addf %117, %116 : vector<8x64xf32>
    %119 = arith.divf %117, %118 : vector<8x64xf32>
    %120 = vector.extract_strided_slice %110 {offsets = [0, 64], sizes = [8, 64], strides = [1, 1]} : vector<8x192xf32> to vector<8x64xf32>
    %121 = vector.extract_strided_slice %111 {offsets = [0, 64], sizes = [8, 64], strides = [1, 1]} : vector<8x192xf32> to vector<8x64xf32>
    %122 = arith.addf %120, %121 : vector<8x64xf32>
    %123 = arith.negf %122 : vector<8x64xf32>
    %124 = math.exp %123 : vector<8x64xf32>
    %cst_33 = arith.constant 1.000000e+00 : f32
    %125 = vector.broadcast %cst_33 : f32 to vector<8x64xf32>
    %126 = arith.addf %125, %124 : vector<8x64xf32>
    %127 = arith.divf %125, %126 : vector<8x64xf32>
    %128 = vector.extract_strided_slice %110 {offsets = [0, 128], sizes = [8, 64], strides = [1, 1]} : vector<8x192xf32> to vector<8x64xf32>
    %129 = vector.extract_strided_slice %111 {offsets = [0, 128], sizes = [8, 64], strides = [1, 1]} : vector<8x192xf32> to vector<8x64xf32>
    %130 = vector.broadcast %9 : vector<1x64xf32> to vector<8x64xf32>
    %131 = arith.addf %129, %130 : vector<8x64xf32>
    %132 = arith.mulf %119, %131 : vector<8x64xf32>
    %133 = arith.addf %128, %132 : vector<8x64xf32>
    %134 = math.tanh %133 : vector<8x64xf32>
    %cst_34 = arith.constant 1.000000e+00 : f32
    %135 = vector.broadcast %cst_34 : f32 to vector<8x64xf32>
    %136 = arith.subf %135, %127 : vector<8x64xf32>
    %137 = arith.mulf %136, %134 : vector<8x64xf32>
    %138 = arith.mulf %127, %109 : vector<8x64xf32>
    %139 = arith.addf %137, %138 : vector<8x64xf32>
    %c3_i32 = arith.constant 3 : i32
    %140 = vector.broadcast %c3_i32 : i32 to vector<8x64xi32>
    %141 = arith.cmpi sgt, %0, %140 : vector<8x64xi32>
    %142 = arith.select %141, %139, %109 : vector<8x64xi1>, vector<8x64xf32>
    %c32 = arith.constant 32 : index
    %c0_35 = arith.constant 0 : index
    %143 = vector.load %arg13[%c32, %c0_35] : memref<80x192xf32, #tpu.memory_space<vmem>>, vector<8x192xf32>
    %cst_36 = arith.constant dense<0.000000e+00> : vector<8x192xf32>
    %144 = tpu.matmul %142, %8, %cst_36 {dimension_numbers = #tpu.dot_dimension_numbers<[1], [0], [0], [1], [0, 0, 1, 1], [], []>} : vector<8x64xf32>, vector<64x192xf32>, vector<8x192xf32> -> vector<8x192xf32>
    %145 = vector.extract_strided_slice %143 {offsets = [0, 0], sizes = [8, 64], strides = [1, 1]} : vector<8x192xf32> to vector<8x64xf32>
    %146 = vector.extract_strided_slice %144 {offsets = [0, 0], sizes = [8, 64], strides = [1, 1]} : vector<8x192xf32> to vector<8x64xf32>
    %147 = arith.addf %145, %146 : vector<8x64xf32>
    %148 = arith.negf %147 : vector<8x64xf32>
    %149 = math.exp %148 : vector<8x64xf32>
    %cst_37 = arith.constant 1.000000e+00 : f32
    %150 = vector.broadcast %cst_37 : f32 to vector<8x64xf32>
    %151 = arith.addf %150, %149 : vector<8x64xf32>
    %152 = arith.divf %150, %151 : vector<8x64xf32>
    %153 = vector.extract_strided_slice %143 {offsets = [0, 64], sizes = [8, 64], strides = [1, 1]} : vector<8x192xf32> to vector<8x64xf32>
    %154 = vector.extract_strided_slice %144 {offsets = [0, 64], sizes = [8, 64], strides = [1, 1]} : vector<8x192xf32> to vector<8x64xf32>
    %155 = arith.addf %153, %154 : vector<8x64xf32>
    %156 = arith.negf %155 : vector<8x64xf32>
    %157 = math.exp %156 : vector<8x64xf32>
    %cst_38 = arith.constant 1.000000e+00 : f32
    %158 = vector.broadcast %cst_38 : f32 to vector<8x64xf32>
    %159 = arith.addf %158, %157 : vector<8x64xf32>
    %160 = arith.divf %158, %159 : vector<8x64xf32>
    %161 = vector.extract_strided_slice %143 {offsets = [0, 128], sizes = [8, 64], strides = [1, 1]} : vector<8x192xf32> to vector<8x64xf32>
    %162 = vector.extract_strided_slice %144 {offsets = [0, 128], sizes = [8, 64], strides = [1, 1]} : vector<8x192xf32> to vector<8x64xf32>
    %163 = vector.broadcast %9 : vector<1x64xf32> to vector<8x64xf32>
    %164 = arith.addf %162, %163 : vector<8x64xf32>
    %165 = arith.mulf %152, %164 : vector<8x64xf32>
    %166 = arith.addf %161, %165 : vector<8x64xf32>
    %167 = math.tanh %166 : vector<8x64xf32>
    %cst_39 = arith.constant 1.000000e+00 : f32
    %168 = vector.broadcast %cst_39 : f32 to vector<8x64xf32>
    %169 = arith.subf %168, %160 : vector<8x64xf32>
    %170 = arith.mulf %169, %167 : vector<8x64xf32>
    %171 = arith.mulf %160, %142 : vector<8x64xf32>
    %172 = arith.addf %170, %171 : vector<8x64xf32>
    %c4_i32 = arith.constant 4 : i32
    %173 = vector.broadcast %c4_i32 : i32 to vector<8x64xi32>
    %174 = arith.cmpi sgt, %0, %173 : vector<8x64xi32>
    %175 = arith.select %174, %172, %142 : vector<8x64xi1>, vector<8x64xf32>
    %c40 = arith.constant 40 : index
    %c0_40 = arith.constant 0 : index
    %176 = vector.load %arg13[%c40, %c0_40] : memref<80x192xf32, #tpu.memory_space<vmem>>, vector<8x192xf32>
    %cst_41 = arith.constant dense<0.000000e+00> : vector<8x192xf32>
    %177 = tpu.matmul %175, %8, %cst_41 {dimension_numbers = #tpu.dot_dimension_numbers<[1], [0], [0], [1], [0, 0, 1, 1], [], []>} : vector<8x64xf32>, vector<64x192xf32>, vector<8x192xf32> -> vector<8x192xf32>
    %178 = vector.extract_strided_slice %176 {offsets = [0, 0], sizes = [8, 64], strides = [1, 1]} : vector<8x192xf32> to vector<8x64xf32>
    %179 = vector.extract_strided_slice %177 {offsets = [0, 0], sizes = [8, 64], strides = [1, 1]} : vector<8x192xf32> to vector<8x64xf32>
    %180 = arith.addf %178, %179 : vector<8x64xf32>
    %181 = arith.negf %180 : vector<8x64xf32>
    %182 = math.exp %181 : vector<8x64xf32>
    %cst_42 = arith.constant 1.000000e+00 : f32
    %183 = vector.broadcast %cst_42 : f32 to vector<8x64xf32>
    %184 = arith.addf %183, %182 : vector<8x64xf32>
    %185 = arith.divf %183, %184 : vector<8x64xf32>
    %186 = vector.extract_strided_slice %176 {offsets = [0, 64], sizes = [8, 64], strides = [1, 1]} : vector<8x192xf32> to vector<8x64xf32>
    %187 = vector.extract_strided_slice %177 {offsets = [0, 64], sizes = [8, 64], strides = [1, 1]} : vector<8x192xf32> to vector<8x64xf32>
    %188 = arith.addf %186, %187 : vector<8x64xf32>
    %189 = arith.negf %188 : vector<8x64xf32>
    %190 = math.exp %189 : vector<8x64xf32>
    %cst_43 = arith.constant 1.000000e+00 : f32
    %191 = vector.broadcast %cst_43 : f32 to vector<8x64xf32>
    %192 = arith.addf %191, %190 : vector<8x64xf32>
    %193 = arith.divf %191, %192 : vector<8x64xf32>
    %194 = vector.extract_strided_slice %176 {offsets = [0, 128], sizes = [8, 64], strides = [1, 1]} : vector<8x192xf32> to vector<8x64xf32>
    %195 = vector.extract_strided_slice %177 {offsets = [0, 128], sizes = [8, 64], strides = [1, 1]} : vector<8x192xf32> to vector<8x64xf32>
    %196 = vector.broadcast %9 : vector<1x64xf32> to vector<8x64xf32>
    %197 = arith.addf %195, %196 : vector<8x64xf32>
    %198 = arith.mulf %185, %197 : vector<8x64xf32>
    %199 = arith.addf %194, %198 : vector<8x64xf32>
    %200 = math.tanh %199 : vector<8x64xf32>
    %cst_44 = arith.constant 1.000000e+00 : f32
    %201 = vector.broadcast %cst_44 : f32 to vector<8x64xf32>
    %202 = arith.subf %201, %193 : vector<8x64xf32>
    %203 = arith.mulf %202, %200 : vector<8x64xf32>
    %204 = arith.mulf %193, %175 : vector<8x64xf32>
    %205 = arith.addf %203, %204 : vector<8x64xf32>
    %c5_i32 = arith.constant 5 : i32
    %206 = vector.broadcast %c5_i32 : i32 to vector<8x64xi32>
    %207 = arith.cmpi sgt, %0, %206 : vector<8x64xi32>
    %208 = arith.select %207, %205, %175 : vector<8x64xi1>, vector<8x64xf32>
    %c48 = arith.constant 48 : index
    %c0_45 = arith.constant 0 : index
    %209 = vector.load %arg13[%c48, %c0_45] : memref<80x192xf32, #tpu.memory_space<vmem>>, vector<8x192xf32>
    %cst_46 = arith.constant dense<0.000000e+00> : vector<8x192xf32>
    %210 = tpu.matmul %208, %8, %cst_46 {dimension_numbers = #tpu.dot_dimension_numbers<[1], [0], [0], [1], [0, 0, 1, 1], [], []>} : vector<8x64xf32>, vector<64x192xf32>, vector<8x192xf32> -> vector<8x192xf32>
    %211 = vector.extract_strided_slice %209 {offsets = [0, 0], sizes = [8, 64], strides = [1, 1]} : vector<8x192xf32> to vector<8x64xf32>
    %212 = vector.extract_strided_slice %210 {offsets = [0, 0], sizes = [8, 64], strides = [1, 1]} : vector<8x192xf32> to vector<8x64xf32>
    %213 = arith.addf %211, %212 : vector<8x64xf32>
    %214 = arith.negf %213 : vector<8x64xf32>
    %215 = math.exp %214 : vector<8x64xf32>
    %cst_47 = arith.constant 1.000000e+00 : f32
    %216 = vector.broadcast %cst_47 : f32 to vector<8x64xf32>
    %217 = arith.addf %216, %215 : vector<8x64xf32>
    %218 = arith.divf %216, %217 : vector<8x64xf32>
    %219 = vector.extract_strided_slice %209 {offsets = [0, 64], sizes = [8, 64], strides = [1, 1]} : vector<8x192xf32> to vector<8x64xf32>
    %220 = vector.extract_strided_slice %210 {offsets = [0, 64], sizes = [8, 64], strides = [1, 1]} : vector<8x192xf32> to vector<8x64xf32>
    %221 = arith.addf %219, %220 : vector<8x64xf32>
    %222 = arith.negf %221 : vector<8x64xf32>
    %223 = math.exp %222 : vector<8x64xf32>
    %cst_48 = arith.constant 1.000000e+00 : f32
    %224 = vector.broadcast %cst_48 : f32 to vector<8x64xf32>
    %225 = arith.addf %224, %223 : vector<8x64xf32>
    %226 = arith.divf %224, %225 : vector<8x64xf32>
    %227 = vector.extract_strided_slice %209 {offsets = [0, 128], sizes = [8, 64], strides = [1, 1]} : vector<8x192xf32> to vector<8x64xf32>
    %228 = vector.extract_strided_slice %210 {offsets = [0, 128], sizes = [8, 64], strides = [1, 1]} : vector<8x192xf32> to vector<8x64xf32>
    %229 = vector.broadcast %9 : vector<1x64xf32> to vector<8x64xf32>
    %230 = arith.addf %228, %229 : vector<8x64xf32>
    %231 = arith.mulf %218, %230 : vector<8x64xf32>
    %232 = arith.addf %227, %231 : vector<8x64xf32>
    %233 = math.tanh %232 : vector<8x64xf32>
    %cst_49 = arith.constant 1.000000e+00 : f32
    %234 = vector.broadcast %cst_49 : f32 to vector<8x64xf32>
    %235 = arith.subf %234, %226 : vector<8x64xf32>
    %236 = arith.mulf %235, %233 : vector<8x64xf32>
    %237 = arith.mulf %226, %208 : vector<8x64xf32>
    %238 = arith.addf %236, %237 : vector<8x64xf32>
    %c6_i32 = arith.constant 6 : i32
    %239 = vector.broadcast %c6_i32 : i32 to vector<8x64xi32>
    %240 = arith.cmpi sgt, %0, %239 : vector<8x64xi32>
    %241 = arith.select %240, %238, %208 : vector<8x64xi1>, vector<8x64xf32>
    %c56 = arith.constant 56 : index
    %c0_50 = arith.constant 0 : index
    %242 = vector.load %arg13[%c56, %c0_50] : memref<80x192xf32, #tpu.memory_space<vmem>>, vector<8x192xf32>
    %cst_51 = arith.constant dense<0.000000e+00> : vector<8x192xf32>
    %243 = tpu.matmul %241, %8, %cst_51 {dimension_numbers = #tpu.dot_dimension_numbers<[1], [0], [0], [1], [0, 0, 1, 1], [], []>} : vector<8x64xf32>, vector<64x192xf32>, vector<8x192xf32> -> vector<8x192xf32>
    %244 = vector.extract_strided_slice %242 {offsets = [0, 0], sizes = [8, 64], strides = [1, 1]} : vector<8x192xf32> to vector<8x64xf32>
    %245 = vector.extract_strided_slice %243 {offsets = [0, 0], sizes = [8, 64], strides = [1, 1]} : vector<8x192xf32> to vector<8x64xf32>
    %246 = arith.addf %244, %245 : vector<8x64xf32>
    %247 = arith.negf %246 : vector<8x64xf32>
    %248 = math.exp %247 : vector<8x64xf32>
    %cst_52 = arith.constant 1.000000e+00 : f32
    %249 = vector.broadcast %cst_52 : f32 to vector<8x64xf32>
    %250 = arith.addf %249, %248 : vector<8x64xf32>
    %251 = arith.divf %249, %250 : vector<8x64xf32>
    %252 = vector.extract_strided_slice %242 {offsets = [0, 64], sizes = [8, 64], strides = [1, 1]} : vector<8x192xf32> to vector<8x64xf32>
    %253 = vector.extract_strided_slice %243 {offsets = [0, 64], sizes = [8, 64], strides = [1, 1]} : vector<8x192xf32> to vector<8x64xf32>
    %254 = arith.addf %252, %253 : vector<8x64xf32>
    %255 = arith.negf %254 : vector<8x64xf32>
    %256 = math.exp %255 : vector<8x64xf32>
    %cst_53 = arith.constant 1.000000e+00 : f32
    %257 = vector.broadcast %cst_53 : f32 to vector<8x64xf32>
    %258 = arith.addf %257, %256 : vector<8x64xf32>
    %259 = arith.divf %257, %258 : vector<8x64xf32>
    %260 = vector.extract_strided_slice %242 {offsets = [0, 128], sizes = [8, 64], strides = [1, 1]} : vector<8x192xf32> to vector<8x64xf32>
    %261 = vector.extract_strided_slice %243 {offsets = [0, 128], sizes = [8, 64], strides = [1, 1]} : vector<8x192xf32> to vector<8x64xf32>
    %262 = vector.broadcast %9 : vector<1x64xf32> to vector<8x64xf32>
    %263 = arith.addf %261, %262 : vector<8x64xf32>
    %264 = arith.mulf %251, %263 : vector<8x64xf32>
    %265 = arith.addf %260, %264 : vector<8x64xf32>
    %266 = math.tanh %265 : vector<8x64xf32>
    %cst_54 = arith.constant 1.000000e+00 : f32
    %267 = vector.broadcast %cst_54 : f32 to vector<8x64xf32>
    %268 = arith.subf %267, %259 : vector<8x64xf32>
    %269 = arith.mulf %268, %266 : vector<8x64xf32>
    %270 = arith.mulf %259, %241 : vector<8x64xf32>
    %271 = arith.addf %269, %270 : vector<8x64xf32>
    %c7_i32 = arith.constant 7 : i32
    %272 = vector.broadcast %c7_i32 : i32 to vector<8x64xi32>
    %273 = arith.cmpi sgt, %0, %272 : vector<8x64xi32>
    %274 = arith.select %273, %271, %241 : vector<8x64xi1>, vector<8x64xf32>
    %c64 = arith.constant 64 : index
    %c0_55 = arith.constant 0 : index
    %275 = vector.load %arg13[%c64, %c0_55] : memref<80x192xf32, #tpu.memory_space<vmem>>, vector<8x192xf32>
    %cst_56 = arith.constant dense<0.000000e+00> : vector<8x192xf32>
    %276 = tpu.matmul %274, %8, %cst_56 {dimension_numbers = #tpu.dot_dimension_numbers<[1], [0], [0], [1], [0, 0, 1, 1], [], []>} : vector<8x64xf32>, vector<64x192xf32>, vector<8x192xf32> -> vector<8x192xf32>
    %277 = vector.extract_strided_slice %275 {offsets = [0, 0], sizes = [8, 64], strides = [1, 1]} : vector<8x192xf32> to vector<8x64xf32>
    %278 = vector.extract_strided_slice %276 {offsets = [0, 0], sizes = [8, 64], strides = [1, 1]} : vector<8x192xf32> to vector<8x64xf32>
    %279 = arith.addf %277, %278 : vector<8x64xf32>
    %280 = arith.negf %279 : vector<8x64xf32>
    %281 = math.exp %280 : vector<8x64xf32>
    %cst_57 = arith.constant 1.000000e+00 : f32
    %282 = vector.broadcast %cst_57 : f32 to vector<8x64xf32>
    %283 = arith.addf %282, %281 : vector<8x64xf32>
    %284 = arith.divf %282, %283 : vector<8x64xf32>
    %285 = vector.extract_strided_slice %275 {offsets = [0, 64], sizes = [8, 64], strides = [1, 1]} : vector<8x192xf32> to vector<8x64xf32>
    %286 = vector.extract_strided_slice %276 {offsets = [0, 64], sizes = [8, 64], strides = [1, 1]} : vector<8x192xf32> to vector<8x64xf32>
    %287 = arith.addf %285, %286 : vector<8x64xf32>
    %288 = arith.negf %287 : vector<8x64xf32>
    %289 = math.exp %288 : vector<8x64xf32>
    %cst_58 = arith.constant 1.000000e+00 : f32
    %290 = vector.broadcast %cst_58 : f32 to vector<8x64xf32>
    %291 = arith.addf %290, %289 : vector<8x64xf32>
    %292 = arith.divf %290, %291 : vector<8x64xf32>
    %293 = vector.extract_strided_slice %275 {offsets = [0, 128], sizes = [8, 64], strides = [1, 1]} : vector<8x192xf32> to vector<8x64xf32>
    %294 = vector.extract_strided_slice %276 {offsets = [0, 128], sizes = [8, 64], strides = [1, 1]} : vector<8x192xf32> to vector<8x64xf32>
    %295 = vector.broadcast %9 : vector<1x64xf32> to vector<8x64xf32>
    %296 = arith.addf %294, %295 : vector<8x64xf32>
    %297 = arith.mulf %284, %296 : vector<8x64xf32>
    %298 = arith.addf %293, %297 : vector<8x64xf32>
    %299 = math.tanh %298 : vector<8x64xf32>
    %cst_59 = arith.constant 1.000000e+00 : f32
    %300 = vector.broadcast %cst_59 : f32 to vector<8x64xf32>
    %301 = arith.subf %300, %292 : vector<8x64xf32>
    %302 = arith.mulf %301, %299 : vector<8x64xf32>
    %303 = arith.mulf %292, %274 : vector<8x64xf32>
    %304 = arith.addf %302, %303 : vector<8x64xf32>
    %c8_i32 = arith.constant 8 : i32
    %305 = vector.broadcast %c8_i32 : i32 to vector<8x64xi32>
    %306 = arith.cmpi sgt, %0, %305 : vector<8x64xi32>
    %307 = arith.select %306, %304, %274 : vector<8x64xi1>, vector<8x64xf32>
    %c72 = arith.constant 72 : index
    %c0_60 = arith.constant 0 : index
    %308 = vector.load %arg13[%c72, %c0_60] : memref<80x192xf32, #tpu.memory_space<vmem>>, vector<8x192xf32>
    %cst_61 = arith.constant dense<0.000000e+00> : vector<8x192xf32>
    %309 = tpu.matmul %307, %8, %cst_61 {dimension_numbers = #tpu.dot_dimension_numbers<[1], [0], [0], [1], [0, 0, 1, 1], [], []>} : vector<8x64xf32>, vector<64x192xf32>, vector<8x192xf32> -> vector<8x192xf32>
    %310 = vector.extract_strided_slice %308 {offsets = [0, 0], sizes = [8, 64], strides = [1, 1]} : vector<8x192xf32> to vector<8x64xf32>
    %311 = vector.extract_strided_slice %309 {offsets = [0, 0], sizes = [8, 64], strides = [1, 1]} : vector<8x192xf32> to vector<8x64xf32>
    %312 = arith.addf %310, %311 : vector<8x64xf32>
    %313 = arith.negf %312 : vector<8x64xf32>
    %314 = math.exp %313 : vector<8x64xf32>
    %cst_62 = arith.constant 1.000000e+00 : f32
    %315 = vector.broadcast %cst_62 : f32 to vector<8x64xf32>
    %316 = arith.addf %315, %314 : vector<8x64xf32>
    %317 = arith.divf %315, %316 : vector<8x64xf32>
    %318 = vector.extract_strided_slice %308 {offsets = [0, 64], sizes = [8, 64], strides = [1, 1]} : vector<8x192xf32> to vector<8x64xf32>
    %319 = vector.extract_strided_slice %309 {offsets = [0, 64], sizes = [8, 64], strides = [1, 1]} : vector<8x192xf32> to vector<8x64xf32>
    %320 = arith.addf %318, %319 : vector<8x64xf32>
    %321 = arith.negf %320 : vector<8x64xf32>
    %322 = math.exp %321 : vector<8x64xf32>
    %cst_63 = arith.constant 1.000000e+00 : f32
    %323 = vector.broadcast %cst_63 : f32 to vector<8x64xf32>
    %324 = arith.addf %323, %322 : vector<8x64xf32>
    %325 = arith.divf %323, %324 : vector<8x64xf32>
    %326 = vector.extract_strided_slice %308 {offsets = [0, 128], sizes = [8, 64], strides = [1, 1]} : vector<8x192xf32> to vector<8x64xf32>
    %327 = vector.extract_strided_slice %309 {offsets = [0, 128], sizes = [8, 64], strides = [1, 1]} : vector<8x192xf32> to vector<8x64xf32>
    %328 = vector.broadcast %9 : vector<1x64xf32> to vector<8x64xf32>
    %329 = arith.addf %327, %328 : vector<8x64xf32>
    %330 = arith.mulf %317, %329 : vector<8x64xf32>
    %331 = arith.addf %326, %330 : vector<8x64xf32>
    %332 = math.tanh %331 : vector<8x64xf32>
    %cst_64 = arith.constant 1.000000e+00 : f32
    %333 = vector.broadcast %cst_64 : f32 to vector<8x64xf32>
    %334 = arith.subf %333, %325 : vector<8x64xf32>
    %335 = arith.mulf %334, %332 : vector<8x64xf32>
    %336 = arith.mulf %325, %307 : vector<8x64xf32>
    %337 = arith.addf %335, %336 : vector<8x64xf32>
    %c9_i32 = arith.constant 9 : i32
    %338 = vector.broadcast %c9_i32 : i32 to vector<8x64xi32>
    %339 = arith.cmpi sgt, %0, %338 : vector<8x64xi32>
    %340 = arith.select %339, %337, %307 : vector<8x64xi1>, vector<8x64xf32>
    %341 = tpu.iota {dimensions = array<i32: 0>} : vector<8x1xi32>
    %c4_i32_65 = arith.constant 4 : i32
    %342 = vector.broadcast %c4_i32_65 : i32 to vector<8x1xi32>
    %343 = arith.cmpi slt, %341, %342 : vector<8x1xi32>
    %344 = arith.extui %343 : vector<8x1xi1> to vector<8x1xi32>
    %345 = arith.sitofp %344 : vector<8x1xi32> to vector<8x1xf32>
    %c0_66 = arith.constant 0 : index
    %c0_67 = arith.constant 0 : index
    %346 = vector.load %arg6[%c0_66, %c0_67] : memref<64x32xf32, #tpu.memory_space<vmem>>, vector<64x32xf32>
    %c0_68 = arith.constant 0 : index
    %c0_69 = arith.constant 0 : index
    %347 = vector.load %arg7[%c0_68, %c0_69] : memref<2x32xf32, #tpu.memory_space<vmem>>, vector<2x32xf32>
    %cst_70 = arith.constant dense<0.000000e+00> : vector<8x32xf32>
    %348 = tpu.matmul %340, %346, %cst_70 {dimension_numbers = #tpu.dot_dimension_numbers<[1], [0], [0], [1], [0, 0, 1, 1], [], []>} : vector<8x64xf32>, vector<64x32xf32>, vector<8x32xf32> -> vector<8x32xf32>
    %349 = vector.broadcast %345 : vector<8x1xf32> to vector<8x32xf32>
    %350 = arith.mulf %348, %349 : vector<8x32xf32>
    %cst_71 = arith.constant dense<0.000000e+00> : vector<32xf32>
    %351 = vector.multi_reduction <add>, %350, %cst_71 [0] : vector<8x32xf32> to vector<32xf32>
    %352 = vector.shape_cast %351 : vector<32xf32> to vector<1x32xf32>
    %cst_72 = arith.constant 2.500000e-01 : f32
    %353 = vector.broadcast %cst_72 : f32 to vector<1x32xf32>
    %354 = arith.mulf %352, %353 : vector<1x32xf32>
    %355 = vector.broadcast %354 : vector<1x32xf32> to vector<8x32xf32>
    %356 = arith.subf %348, %355 : vector<8x32xf32>
    %357 = vector.broadcast %345 : vector<8x1xf32> to vector<8x32xf32>
    %358 = arith.mulf %356, %357 : vector<8x32xf32>
    %359 = arith.mulf %358, %358 : vector<8x32xf32>
    %cst_73 = arith.constant dense<0.000000e+00> : vector<32xf32>
    %360 = vector.multi_reduction <add>, %359, %cst_73 [0] : vector<8x32xf32> to vector<32xf32>
    %361 = vector.shape_cast %360 : vector<32xf32> to vector<1x32xf32>
    %cst_74 = arith.constant 2.500000e-01 : f32
    %362 = vector.broadcast %cst_74 : f32 to vector<1x32xf32>
    %363 = arith.mulf %361, %362 : vector<1x32xf32>
    %364 = vector.broadcast %354 : vector<1x32xf32> to vector<8x32xf32>
    %365 = arith.subf %348, %364 : vector<8x32xf32>
    %cst_75 = arith.constant 9.99999974E-6 : f32
    %366 = vector.broadcast %cst_75 : f32 to vector<1x32xf32>
    %367 = arith.addf %363, %366 : vector<1x32xf32>
    %368 = math.rsqrt %367 : vector<1x32xf32>
    %369 = vector.broadcast %368 : vector<1x32xf32> to vector<8x32xf32>
    %370 = arith.mulf %365, %369 : vector<8x32xf32>
    %371 = vector.extract_strided_slice %347 {offsets = [0, 0], sizes = [1, 32], strides = [1, 1]} : vector<2x32xf32> to vector<1x32xf32>
    %372 = vector.broadcast %371 : vector<1x32xf32> to vector<8x32xf32>
    %373 = arith.mulf %370, %372 : vector<8x32xf32>
    %374 = vector.extract_strided_slice %347 {offsets = [1, 0], sizes = [1, 32], strides = [1, 1]} : vector<2x32xf32> to vector<1x32xf32>
    %375 = vector.broadcast %374 : vector<1x32xf32> to vector<8x32xf32>
    %376 = arith.addf %373, %375 : vector<8x32xf32>
    %cst_76 = arith.constant 0.000000e+00 : f32
    %377 = vector.broadcast %cst_76 : f32 to vector<8x32xf32>
    %378 = arith.maximumf %376, %377 : vector<8x32xf32>
    %c0_77 = arith.constant 0 : index
    %c0_78 = arith.constant 0 : index
    %379 = vector.load %arg8[%c0_77, %c0_78] : memref<32x32xf32, #tpu.memory_space<vmem>>, vector<32x32xf32>
    %c0_79 = arith.constant 0 : index
    %c0_80 = arith.constant 0 : index
    %380 = vector.load %arg9[%c0_79, %c0_80] : memref<2x32xf32, #tpu.memory_space<vmem>>, vector<2x32xf32>
    %cst_81 = arith.constant dense<0.000000e+00> : vector<8x32xf32>
    %381 = tpu.matmul %378, %379, %cst_81 {dimension_numbers = #tpu.dot_dimension_numbers<[1], [0], [0], [1], [0, 0, 1, 1], [], []>} : vector<8x32xf32>, vector<32x32xf32>, vector<8x32xf32> -> vector<8x32xf32>
    %382 = vector.broadcast %345 : vector<8x1xf32> to vector<8x32xf32>
    %383 = arith.mulf %381, %382 : vector<8x32xf32>
    %cst_82 = arith.constant dense<0.000000e+00> : vector<32xf32>
    %384 = vector.multi_reduction <add>, %383, %cst_82 [0] : vector<8x32xf32> to vector<32xf32>
    %385 = vector.shape_cast %384 : vector<32xf32> to vector<1x32xf32>
    %cst_83 = arith.constant 2.500000e-01 : f32
    %386 = vector.broadcast %cst_83 : f32 to vector<1x32xf32>
    %387 = arith.mulf %385, %386 : vector<1x32xf32>
    %388 = vector.broadcast %387 : vector<1x32xf32> to vector<8x32xf32>
    %389 = arith.subf %381, %388 : vector<8x32xf32>
    %390 = vector.broadcast %345 : vector<8x1xf32> to vector<8x32xf32>
    %391 = arith.mulf %389, %390 : vector<8x32xf32>
    %392 = arith.mulf %391, %391 : vector<8x32xf32>
    %cst_84 = arith.constant dense<0.000000e+00> : vector<32xf32>
    %393 = vector.multi_reduction <add>, %392, %cst_84 [0] : vector<8x32xf32> to vector<32xf32>
    %394 = vector.shape_cast %393 : vector<32xf32> to vector<1x32xf32>
    %cst_85 = arith.constant 2.500000e-01 : f32
    %395 = vector.broadcast %cst_85 : f32 to vector<1x32xf32>
    %396 = arith.mulf %394, %395 : vector<1x32xf32>
    %397 = vector.broadcast %387 : vector<1x32xf32> to vector<8x32xf32>
    %398 = arith.subf %381, %397 : vector<8x32xf32>
    %cst_86 = arith.constant 9.99999974E-6 : f32
    %399 = vector.broadcast %cst_86 : f32 to vector<1x32xf32>
    %400 = arith.addf %396, %399 : vector<1x32xf32>
    %401 = math.rsqrt %400 : vector<1x32xf32>
    %402 = vector.broadcast %401 : vector<1x32xf32> to vector<8x32xf32>
    %403 = arith.mulf %398, %402 : vector<8x32xf32>
    %404 = vector.extract_strided_slice %380 {offsets = [0, 0], sizes = [1, 32], strides = [1, 1]} : vector<2x32xf32> to vector<1x32xf32>
    %405 = vector.broadcast %404 : vector<1x32xf32> to vector<8x32xf32>
    %406 = arith.mulf %403, %405 : vector<8x32xf32>
    %407 = vector.extract_strided_slice %380 {offsets = [1, 0], sizes = [1, 32], strides = [1, 1]} : vector<2x32xf32> to vector<1x32xf32>
    %408 = vector.broadcast %407 : vector<1x32xf32> to vector<8x32xf32>
    %409 = arith.addf %406, %408 : vector<8x32xf32>
    %cst_87 = arith.constant 0.000000e+00 : f32
    %410 = vector.broadcast %cst_87 : f32 to vector<8x32xf32>
    %411 = arith.maximumf %409, %410 : vector<8x32xf32>
    %c0_88 = arith.constant 0 : index
    %c0_89 = arith.constant 0 : index
    %412 = vector.load %arg10[%c0_88, %c0_89] : memref<32x32xf32, #tpu.memory_space<vmem>>, vector<32x32xf32>
    %c0_90 = arith.constant 0 : index
    %c0_91 = arith.constant 0 : index
    %413 = vector.load %arg11[%c0_90, %c0_91] : memref<2x32xf32, #tpu.memory_space<vmem>>, vector<2x32xf32>
    %cst_92 = arith.constant dense<0.000000e+00> : vector<8x32xf32>
    %414 = tpu.matmul %411, %412, %cst_92 {dimension_numbers = #tpu.dot_dimension_numbers<[1], [0], [0], [1], [0, 0, 1, 1], [], []>} : vector<8x32xf32>, vector<32x32xf32>, vector<8x32xf32> -> vector<8x32xf32>
    %415 = vector.broadcast %345 : vector<8x1xf32> to vector<8x32xf32>
    %416 = arith.mulf %414, %415 : vector<8x32xf32>
    %cst_93 = arith.constant dense<0.000000e+00> : vector<32xf32>
    %417 = vector.multi_reduction <add>, %416, %cst_93 [0] : vector<8x32xf32> to vector<32xf32>
    %418 = vector.shape_cast %417 : vector<32xf32> to vector<1x32xf32>
    %cst_94 = arith.constant 2.500000e-01 : f32
    %419 = vector.broadcast %cst_94 : f32 to vector<1x32xf32>
    %420 = arith.mulf %418, %419 : vector<1x32xf32>
    %421 = vector.broadcast %420 : vector<1x32xf32> to vector<8x32xf32>
    %422 = arith.subf %414, %421 : vector<8x32xf32>
    %423 = vector.broadcast %345 : vector<8x1xf32> to vector<8x32xf32>
    %424 = arith.mulf %422, %423 : vector<8x32xf32>
    %425 = arith.mulf %424, %424 : vector<8x32xf32>
    %cst_95 = arith.constant dense<0.000000e+00> : vector<32xf32>
    %426 = vector.multi_reduction <add>, %425, %cst_95 [0] : vector<8x32xf32> to vector<32xf32>
    %427 = vector.shape_cast %426 : vector<32xf32> to vector<1x32xf32>
    %cst_96 = arith.constant 2.500000e-01 : f32
    %428 = vector.broadcast %cst_96 : f32 to vector<1x32xf32>
    %429 = arith.mulf %427, %428 : vector<1x32xf32>
    %430 = vector.broadcast %420 : vector<1x32xf32> to vector<8x32xf32>
    %431 = arith.subf %414, %430 : vector<8x32xf32>
    %cst_97 = arith.constant 9.99999974E-6 : f32
    %432 = vector.broadcast %cst_97 : f32 to vector<1x32xf32>
    %433 = arith.addf %429, %432 : vector<1x32xf32>
    %434 = math.rsqrt %433 : vector<1x32xf32>
    %435 = vector.broadcast %434 : vector<1x32xf32> to vector<8x32xf32>
    %436 = arith.mulf %431, %435 : vector<8x32xf32>
    %437 = vector.extract_strided_slice %413 {offsets = [0, 0], sizes = [1, 32], strides = [1, 1]} : vector<2x32xf32> to vector<1x32xf32>
    %438 = vector.broadcast %437 : vector<1x32xf32> to vector<8x32xf32>
    %439 = arith.mulf %436, %438 : vector<8x32xf32>
    %440 = vector.extract_strided_slice %413 {offsets = [1, 0], sizes = [1, 32], strides = [1, 1]} : vector<2x32xf32> to vector<1x32xf32>
    %441 = vector.broadcast %440 : vector<1x32xf32> to vector<8x32xf32>
    %442 = arith.addf %439, %441 : vector<8x32xf32>
    %443 = math.tanh %442 : vector<8x32xf32>
    %c0_98 = arith.constant 0 : index
    %c0_99 = arith.constant 0 : index
    %444 = vector.load %arg12[%c0_98, %c0_99] : memref<8x32xf32, #tpu.memory_space<vmem>>, vector<8x32xf32>
    tpu.vector_store %arg12[%c0_98, %c0_99], %443 {strides = array<i32>} : memref<8x32xf32, #tpu.memory_space<vmem>>, vector<8x32xf32>,
    return
  }
}

</mosaic_0001>

<bundles_post_ra>
// kernel: text_encoder_forward.1
= control target key start
LH: loop header
LB: loop body
LE: loop exit
PB: predicated region body
PF: predicated region fallthrough
CT: control target
= control target key end

     0   :  { %vm68_vm0 = vcmask 326656   ;;  %v1426_v26 = vmov 0.0   ;;  %vm194_vm1 = vcmask 523264   ;;  %s1427_s22 = smov 64   ;;  %s2054_s5 = inlined_call_operand.vmem [shape: f32[64,192], index: 5, kind: input, shape index: {}]   ;;  %s2055_s2 = inlined_call_operand.vmem [shape: f32[40,192], index: 2, kind: input, shape index: {}]   ;;  %s2056_s0 = inlined_call_operand.vmem [shape: f32[80,40], index: 0, kind: input, shape index: {}]   ;;  %s2057_s4 = inlined_call_operand.vmem [shape: f32[1,64], index: 4, kind: input, shape index: {}]   ;;  %s2058_s3 = inlined_call_operand.vmem [shape: f32[1,192], index: 3, kind: input, shape index: {}]   ;;  %s2059_s1 = inlined_call_operand.vmem [shape: s32[8,64], index: 1, kind: input, shape index: {}]   ;;  %s2060_s6 = inlined_call_operand.vmem [shape: f32[64,32], index: 6, kind: input, shape index: {}]   ;;  %s2061_s8 = inlined_call_operand.vmem [shape: f32[32,32], index: 8, kind: input, shape index: {}]   ;;  %s2062_s7 = inlined_call_operand.vmem [shape: f32[2,32], index: 7, kind: input, shape index: {}]   ;;  %s2063_s10 = inlined_call_operand.vmem [shape: f32[32,32], index: 10, kind: input, shape index: {}]   ;;  %s2064_s9 = inlined_call_operand.vmem [shape: f32[2,32], index: 9, kind: input, shape index: {}]   ;;  %s2065_s11 = inlined_call_operand.vmem [shape: f32[2,32], index: 11, kind: input, shape index: {}]   ;;  %s2066_s12 = inlined_call_operand.vmem [shape: f32[8,32], index: 12, kind: output, shape index: {}]  }
   0x1   :  { %v1496_v0 = vld [vmem:[%s2054_s5 + $0x70] sm:$0xff]  ;;  %v60_v1 = vld [vmem:[%s2055_s2 + $0x40] sm:$0xff]  ;;  %v1530_v8 = vld [vmem:[%s2054_s5 + $0x78] sm:$0xff] }
   0x2   :  { %v1504_v2 = vld [vmem:[%s2054_s5 + $0x60] sm:$0xff]  ;;  %244 = vmatpush.msra.mxu2 %v1496_v0  ;;  %110 = vmatpush.msra.mxu0 %v60_v1  ;;  %v58_v3 = vld [vmem:[%s2055_s2 + $0x30] sm:$0xff]  ;;  %v1536_v9 = vld [vmem:[%s2054_s5 + $0x68] sm:$0xff] }
   0x3   :  { %v1513_v4 = vld [vmem:[%s2054_s5 + $0x50] sm:$0xff]  ;;  %v56_v5 = vld [vmem:[%s2055_s2 + $0x20] sm:$0xff]  ;;  %v61_v10 = vld [vmem:[%s2055_s2 + $0x48] sm:$0xff]  ;;  %264 = vmatpush.msra.mxu3 %v1530_v8 }
   0x4   :  { %245 = vmatpush.msra.mxu2 %v1504_v2  ;;  %111 = vmatpush.msra.mxu0 %v58_v3  ;;  %v1522_v6 = vld [vmem:[%s2054_s5 + $0x40] sm:$0xff]  ;;  %v54_v7 = vld [vmem:[%s2055_s2 + $0x10] sm:$0xff]  ;;  %v59_v13 = vld [vmem:[%s2055_s2 + $0x38] sm:$0xff] }
   0x5   :  { %v1544_v11 = vld [vmem:[%s2054_s5 + $0x30] sm:$0xff]  ;;  %v52_v12 = vld [vmem:[%s2055_s2] sm:$0xff]  ;;  %157 = vmatpush.msra.mxu1 %v61_v10  ;;  %v1560_v15 = vld [vmem:[%s2054_s5 + $0x58] sm:$0xff]  ;;  %265 = vmatpush.msra.mxu3 %v1536_v9 }
   0x6   :  { %246 = vmatpush.msra.mxu2 %v1513_v4  ;;  %112 = vmatpush.msra.mxu0 %v56_v5  ;;  %v42_v14 = vld [vmem:[%s2056_s0] sm:$0xff]  ;;  %v57_v17 = vld [vmem:[%s2055_s2 + $0x28] sm:$0xff]  ;;  %v1581_v19 = vld [vmem:[%s2054_s5 + $0x10] sm:$0xff] }
   0x7   :  { %v1565_v16 = vld [vmem:[%s2054_s5 + $0x20] sm:$0xff]  ;;  %158 = vmatpush.msra.mxu1 %v59_v13  ;;  %v1575_v18 = vld [vmem:[%s2054_s5 + $0x48] sm:$0xff]  ;;  %266 = vmatpush.msra.mxu3 %v1560_v15  ;;  %v55_v20 = vld [vmem:[%s2055_s2 + $0x18] sm:$0xff] }
   0x8   :  { %247 = vmatpush.msra.mxu2 %v1522_v6  ;;  %113 = vmatpush.msra.mxu0 %v54_v7  ;;  %v1591_v21 = vld [vmem:[%s2054_s5 + $0x38] sm:$0xff]  ;;  %v1596_v22 = vld [vmem:[%s2054_s5] sm:$0xff]  ;;  %v53_v23 = vld [vmem:[%s2055_s2 + $0x8] sm:$0xff] }
   0x9   :  { %159 = vmatpush.msra.mxu1 %v57_v17  ;;  %267 = vmatpush.msra.mxu3 %v1575_v18  ;;  %v1607_v24 = vld [vmem:[%s2054_s5 + $0x28] sm:$0xff]  ;;  %v1615_v25 = vld [vmem:[%s2054_s5 + $0x18] sm:$0xff]  ;;  %v62_v28 = vld [vmem:[%s2058_s3] sm:$0x3] }
   0xa   :  { %248 = vmatpush.msra.mxu2 %v1544_v11  ;;  %114 = vmatpush.msra.mxu0 %v52_v12  ;;  %v1622_v27 = vld [vmem:[%s2054_s5 + $0x8] sm:$0xff]  ;;  %v1693_v29 = vperm.slane %v62_v28, 0  ;;  %v1696_v32 = vperm.slane %v62_v28, 1  ;;  %v1703_v43 = vld [vmem:[%s2057_s4] ss:$0 sm:$0xff] }
   0xb   :  { %1301 = vmatmul.msk.f32.vlgmr.msra.gmra.mxu0 %vm68_vm0, %v42_v14  ;;  %160 = vmatpush.msra.mxu1 %v55_v20  ;;  %v43_v57 = vld [vmem:[%s2056_s0 + $0x8] sm:$0xff]  ;;  %v1717_v3 = vld [vmem:[%s2059_s1] sm:$0xff] }
   0xc   :  { %249 = vmatpush.msra.mxu2 %v1565_v16  ;;  %674 = vmatpush.msrb.mxu0 %v1496_v0  ;;  %vm311_vm6 = vcmp.gt.s32.totalorder %v1717_v3, 0  ;;  %vm397_vm11 = vcmp.gt.s32.totalorder %v1717_v3, 1 }
   0xd   :  { %268 = vmatpush.msra.mxu3 %v1591_v21  ;;  %161 = vmatpush.msra.mxu1 %v53_v23 }
   0xe   :  { %250 = vmatpush.msra.mxu2 %v1581_v19  ;;  %675 = vmatpush.msrb.mxu0 %v1504_v2 }
   0xf   :  { %269 = vmatpush.msra.mxu3 %v1607_v24  ;;  %1311 = vmatmul.msk.f32.vlgmr.msra.gmra.mxu1 %vm68_vm0, %v42_v14 }
  0x10   :  { %251 = vmatpush.msra.mxu2 %v1596_v22  ;;  %676 = vmatpush.msrb.mxu0 %v1513_v4 }
  0x11   :  { %252 = vmatmul.f32.vlgmr.msra.gmra.mxu2 %v1426_v26  ;;  %270 = vmatpush.msra.mxu3 %v1615_v25 }
  0x12   :  { %330 = vmatpush.msrb.mxu2 %v1496_v0  ;;  %694 = vmatpush.msrb.mxu1 %v1530_v8 }
  0x13   :  { %271 = vmatpush.msra.mxu3 %v1622_v27  ;;  %677 = vmatpush.msrb.mxu0 %v1522_v6 }
  0x14   :  { %331 = vmatpush.msrb.mxu2 %v1504_v2  ;;  %272 = vmatmul.f32.vlgmr.msra.gmra.mxu3 %v1426_v26 }
  0x15   :  { %350 = vmatpush.msrb.mxu3 %v1530_v8  ;;  %695 = vmatpush.msrb.mxu1 %v1536_v9 }
  0x16   :  { %332 = vmatpush.msrb.mxu2 %v1513_v4  ;;  %678 = vmatpush.msrb.mxu0 %v1544_v11 }
  0x17   :  { %351 = vmatpush.msrb.mxu3 %v1536_v9  ;;  %696 = vmatpush.msrb.mxu1 %v1560_v15 }
  0x18   :  { %333 = vmatpush.msrb.mxu2 %v1522_v6  ;;  %679 = vmatpush.msrb.mxu0 %v1565_v16 }
  0x19   :  { %352 = vmatpush.msrb.mxu3 %v1560_v15  ;;  %697 = vmatpush.msrb.mxu1 %v1575_v18 }
  0x1a   :  { %334 = vmatpush.msrb.mxu2 %v1544_v11  ;;  %680 = vmatpush.msrb.mxu0 %v1581_v19 }
  0x1b   :  { %353 = vmatpush.msrb.mxu3 %v1575_v18  ;;  %698 = vmatpush.msrb.mxu1 %v1591_v21 }
  0x1c   :  { %335 = vmatpush.msrb.mxu2 %v1565_v16  ;;  %681 = vmatpush.msrb.mxu0 %v1596_v22 }
  0x1d   :  { %354 = vmatpush.msrb.mxu3 %v1591_v21  ;;  %699 = vmatpush.msrb.mxu1 %v1607_v24 }
  0x1e   :  { %336 = vmatpush.msrb.mxu2 %v1581_v19  ;;  %846 = vmatpush.msra.mxu0 %v1496_v0 }
  0x1f   :  { %355 = vmatpush.msrb.mxu3 %v1607_v24  ;;  %700 = vmatpush.msrb.mxu1 %v1615_v25 }
  0x20   :  { %337 = vmatpush.msrb.mxu2 %v1596_v22  ;;  %847 = vmatpush.msra.mxu0 %v1504_v2 }
  0x21   :  { %356 = vmatpush.msrb.mxu3 %v1615_v25  ;;  %701 = vmatpush.msrb.mxu1 %v1622_v27 }
  0x22   :  { %416 = vmatpush.msra.mxu2 %v1496_v0  ;;  %848 = vmatpush.msra.mxu0 %v1513_v4 }
  0x23   :  { %357 = vmatpush.msrb.mxu3 %v1622_v27  ;;  %866 = vmatpush.msra.mxu1 %v1530_v8 }
  0x24   :  { %417 = vmatpush.msra.mxu2 %v1504_v2  ;;  %849 = vmatpush.msra.mxu0 %v1522_v6 }
  0x25   :  { %436 = vmatpush.msra.mxu3 %v1530_v8  ;;  %867 = vmatpush.msra.mxu1 %v1536_v9 }
  0x26   :  { %418 = vmatpush.msra.mxu2 %v1513_v4  ;;  %850 = vmatpush.msra.mxu0 %v1544_v11 }
  0x27   :  { %437 = vmatpush.msra.mxu3 %v1536_v9  ;;  %868 = vmatpush.msra.mxu1 %v1560_v15 }
  0x28   :  { %419 = vmatpush.msra.mxu2 %v1522_v6  ;;  %851 = vmatpush.msra.mxu0 %v1565_v16 }
  0x29   :  { %438 = vmatpush.msra.mxu3 %v1560_v15  ;;  %869 = vmatpush.msra.mxu1 %v1575_v18 }
  0x2a   :  { %420 = vmatpush.msra.mxu2 %v1544_v11  ;;  %852 = vmatpush.msra.mxu0 %v1581_v19 }
  0x2b   :  { %439 = vmatpush.msra.mxu3 %v1575_v18  ;;  %870 = vmatpush.msra.mxu1 %v1591_v21 }
  0x2c   :  { %421 = vmatpush.msra.mxu2 %v1565_v16  ;;  %853 = vmatpush.msra.mxu0 %v1596_v22 }
  0x2d   :  { %440 = vmatpush.msra.mxu3 %v1591_v21  ;;  %871 = vmatpush.msra.mxu1 %v1607_v24 }
  0x2e   :  { %422 = vmatpush.msra.mxu2 %v1581_v19  ;;  %1302 = vmatmul.msk.f32.gmra.mxu0 %vm68_vm0, %v43_v57 }
  0x2f   :  { %441 = vmatpush.msra.mxu3 %v1607_v24  ;;  %872 = vmatpush.msra.mxu1 %v1615_v25 }
  0x30   :  { %423 = vmatpush.msra.mxu2 %v1596_v22  ;;  %1312 = vmatmul.msk.f32.gmra.mxu1 %vm68_vm0, %v43_v57 }
  0x31   :  { %442 = vmatpush.msra.mxu3 %v1615_v25  ;;  %873 = vmatpush.msra.mxu1 %v1622_v27 }
  0x33   :  { %443 = vmatpush.msra.mxu3 %v1622_v27 }
  0x88   :  { %v116_v30 = vpop.f32.mrf.mxu0 }
  0x89   :  { %v117_v31 = vadd.f32 %v116_v30, %v1693_v29 }
  0x8c   :  { %v163_v33 = vpop.f32.mrf.mxu1 }
  0x8d   :  { %v164_v34 = vadd.f32 %v163_v33, %v1696_v32 }
  0x8f   :  { %195 = vst.msk [vmem:[#allocation2 + $0x8] sm:$0xff] %vm194_vm1, %v164_v34 }
  0x94   :  { %v253_v35 = vpop.f32.mrf.mxu2 }
  0x95   :  { %v276_v36 = vadd.f32 %v253_v35, %v117_v31 }
  0x96   :  { %v232_v52 = vld [vmem:[#allocation2 + $0x8] sm:$0xff] }
  0x97   :  { %v1321_v37 = vmul.f32 -1.442695, %v276_v36  ;;  %v273_v44 = vpop.f32.mrf.mxu3 }
  0x98   :  { %v299_v49 = vadd.f32 %v1703_v43, %v273_v44 }
  0x99   :  { %1356 = vpow2.f32 %v1321_v37 }
  0x9f   :  { %v1357_v38 = vpop.eup %1356 }
  0xa0   :  { %v280_v39 = vadd.f32 1.0, %v1357_v38 }
  0xa2   :  { %1358 = vrcp.f32 %v280_v39  ;;  %v292_v45 = vand.u32 2147483648, %v280_v39  ;;  %v290_v47 = vand.u32 2147483647, %v280_v39  ;;  %vm286_vm3 = vweird.f32 %v280_v39 }
  0xa4   :  { %v293_v50 = vor.u32 1.1754944e-38, %v292_v45  ;;  %vm291_vm5 = vcmp.eq.f32.partialorder %v290_v47, 8.507059e+37  ;;  %v44_v47 = vld [vmem:[%s2056_s0 + $0x10] sm:$0xff] }
  0xa5   :  { %1303 = vmatmul.msk.f32.gmra.mxu0 %vm68_vm0, %v44_v47  ;;  %1313 = vmatmul.msk.f32.gmra.mxu1 %vm68_vm0, %v44_v47 }
  0xa8   :  { %v1359_v40 = vpop.eup %1358 }
  0xa9   :  { %v282_v41 = vmul.f32 %v1359_v40, %v280_v39  ;;  %vm287_vm2 = vweird.f32 %v1359_v40 }
  0xaa   :  { %vm288_vm4 = vmor %vm286_vm3, %vm287_vm2  ;;  %vm483_vm2 = vcmp.gt.s32.totalorder %v1717_v3, 2 }
  0xab   :  { %v283_v42 = vsub.f32 1.0, %v282_v41  ;;  %v119_v63 = vpop.f32.mrf.mxu0 }
  0xac   :  { %v120_v1 = vadd.f32 %v119_v63, %v1693_v29 }
  0xad   :  { %v284_v46 = vmul.f32 %v1359_v40, %v283_v42  ;;  %v166_v10 = vpop.f32.mrf.mxu1 }
  0xae   :  { %v167_v12 = vadd.f32 %v166_v10, %v1696_v32 }
  0xaf   :  { %v285_v48 = vadd.f32 %v1359_v40, %v284_v46 }
  0xb0   :  { %197 = vst.msk [vmem:[#allocation2 + $0x18] sm:$0xff] %vm194_vm1, %v167_v12 }
  0xb1   :  { %v289_v51 = vsel %vm288_vm4, %v1359_v40, %v285_v48 }
  0xb2   :  { %v294_v53 = vsel %vm291_vm5, %v293_v50, %v289_v51 }
  0xb3   :  { %v300_v54 = vmul.f32 %v299_v49, %v294_v53  ;;  %v303_v58 = vsub.f32 1.0, %v294_v53  ;;  %v309_v60 = vmul.f32 0.0, %v294_v53 }
  0xb5   :  { %v301_v55 = vadd.f32 %v300_v54, %v232_v52 }
  0xb7   :  { %1360 = vtanh.f32 %v301_v55  ;;  %v318_v42 = vld [vmem:[#allocation2 + $0x18] sm:$0xff] }
  0xbd   :  { %v1361_v56 = vpop.eup %1360 }
  0xbe   :  { %305 = vrot.lane.b32.xlu0 %v1361_v56, %s1427_s22 }
 0x122   :  { %v122_v56 = vpop.f32.mrf.mxu0 }
 0x123   :  { %v123_v57 = vadd.f32 %v122_v56, %v1693_v29 }
 0x130   :  { %v306_v59 = vpop.permute.xlu0 %305 }
 0x131   :  { %v308_v61 = vmul.f32 %v306_v59, %v303_v58  ;;  %v169_v58 = vpop.f32.mrf.mxu1 }
 0x132   :  { %v170_v59 = vadd.f32 %v169_v58, %v1696_v32 }
 0x133   :  { %v310_v62 = vadd.f32 %v309_v60, %v308_v61 }
 0x134   :  { %199 = vst.msk [vmem:[#allocation2 + $0x28] sm:$0xff] %vm194_vm1, %v170_v59 }
 0x135   :  { %313 = vrot.lane.b32.xlu0 %v310_v62, %s1427_s22 }
 0x1a7   :  { %v314_v5 = vpop.permute.xlu0 %313 }
 0x1a8   :  { %v1720_v7 = vsel %vm311_vm6, %v314_v5, 0.0 }
 0x1a9   :  { %1322 = vmatmul.msk.f32.vlgmr.msrb.gmra.mxu2 %vm194_vm1, %v1720_v7  ;;  %1323 = vmatmul.msk.f32.vlgmr.msrb.gmra.mxu3 %vm194_vm1, %v1720_v7 }
 0x1aa   :  { %502 = vmatpush.msrb.mxu2 %v1496_v0  ;;  %522 = vmatpush.msrb.mxu3 %v1530_v8 }
 0x1ac   :  { %503 = vmatpush.msrb.mxu2 %v1504_v2  ;;  %523 = vmatpush.msrb.mxu3 %v1536_v9 }
 0x1ae   :  { %504 = vmatpush.msrb.mxu2 %v1513_v4  ;;  %524 = vmatpush.msrb.mxu3 %v1560_v15 }
 0x1b0   :  { %505 = vmatpush.msrb.mxu2 %v1522_v6  ;;  %525 = vmatpush.msrb.mxu3 %v1575_v18 }
 0x1b2   :  { %506 = vmatpush.msrb.mxu2 %v1544_v11  ;;  %526 = vmatpush.msrb.mxu3 %v1591_v21 }
 0x1b4   :  { %507 = vmatpush.msrb.mxu2 %v1565_v16  ;;  %527 = vmatpush.msrb.mxu3 %v1607_v24 }
 0x1b6   :  { %508 = vmatpush.msrb.mxu2 %v1581_v19  ;;  %528 = vmatpush.msrb.mxu3 %v1615_v25 }
 0x1b8   :  { %509 = vmatpush.msrb.mxu2 %v1596_v22  ;;  %529 = vmatpush.msrb.mxu3 %v1622_v27 }
 0x22c   :  { %v339_v13 = vpop.f32.mrf.mxu2  ;;  %v359_v36 = vpop.f32.mrf.mxu3 }
 0x22d   :  { %v362_v14 = vadd.f32 %v339_v13, %v120_v1  ;;  %v382_v40 = vadd.f32 %v1703_v43, %v359_v36 }
 0x22f   :  { %v1324_v17 = vmul.f32 -1.442695, %v362_v14 }
 0x231   :  { %1362 = vpow2.f32 %v1324_v17 }
 0x237   :  { %v1363_v20 = vpop.eup %1362 }
 0x238   :  { %v366_v23 = vadd.f32 1.0, %v1363_v20 }
 0x23a   :  { %1364 = vrcp.f32 %v366_v23  ;;  %v378_v33 = vand.u32 2147483648, %v366_v23  ;;  %v376_v35 = vand.u32 2147483647, %v366_v23  ;;  %vm372_vm8 = vweird.f32 %v366_v23 }
 0x23c   :  { %v379_v38 = vor.u32 1.1754944e-38, %v378_v33  ;;  %vm377_vm10 = vcmp.eq.f32.partialorder %v376_v35, 8.507059e+37  ;;  %v404_v33 = vld [vmem:[#allocation2 + $0x28] sm:$0xff] }
 0x240   :  { %v1365_v28 = vpop.eup %1364 }
 0x241   :  { %v368_v30 = vmul.f32 %v1365_v28, %v366_v23  ;;  %vm373_vm7 = vweird.f32 %v1365_v28 }
 0x242   :  { %vm374_vm9 = vmor %vm372_vm8, %vm373_vm7  ;;  %vm569_vm7 = vcmp.gt.s32.totalorder %v1717_v3, 3 }
 0x243   :  { %v369_v31 = vsub.f32 1.0, %v368_v30 }
 0x245   :  { %v370_v34 = vmul.f32 %v1365_v28, %v369_v31 }
 0x247   :  { %v371_v37 = vadd.f32 %v1365_v28, %v370_v34 }
 0x249   :  { %v375_v39 = vsel %vm374_vm9, %v1365_v28, %v371_v37  ;;  %v45_v37 = vld [vmem:[%s2056_s0 + $0x18] sm:$0xff] }
 0x24a   :  { %v380_v41 = vsel %vm377_vm10, %v379_v38, %v375_v39  ;;  %1304 = vmatmul.msk.f32.gmra.mxu0 %vm68_vm0, %v45_v37  ;;  %1314 = vmatmul.msk.f32.gmra.mxu1 %vm68_vm0, %v45_v37 }
 0x24b   :  { %v383_v44 = vmul.f32 %v382_v40, %v380_v41  ;;  %v386_v49 = vsub.f32 1.0, %v380_v41 }
 0x24d   :  { %v384_v45 = vadd.f32 %v383_v44, %v318_v42 }
 0x24f   :  { %1366 = vtanh.f32 %v384_v45 }
 0x255   :  { %v1367_v46 = vpop.eup %1366 }
 0x256   :  { %388 = vrot.lane.b32.xlu1 %v1367_v46, %s1427_s22 }
 0x25e   :  { %392 = vrot.lane.b32.xlu1 %v1720_v7, %s1427_s22 }
 0x2c7   :  { %v125_v47 = vpop.f32.mrf.mxu0 }
 0x2c8   :  { %v389_v48 = vpop.permute.xlu1 %388 }
 0x2c9   :  { %v391_v51 = vmul.f32 %v389_v48, %v386_v49  ;;  %v126_v48 = vadd.f32 %v125_v47, %v1693_v29  ;;  %v172_v49 = vpop.f32.mrf.mxu1 }
 0x2d0   :  { %v393_v50 = vpop.permute.xlu1 %392 }
 0x2d1   :  { %v395_v52 = vmul.f32 %v393_v50, %v380_v41  ;;  %v173_v50 = vadd.f32 %v172_v49, %v1696_v32 }
 0x2d3   :  { %v396_v53 = vadd.f32 %v395_v52, %v391_v51  ;;  %201 = vst.msk [vmem:[#allocation2 + $0x38] sm:$0xff] %vm194_vm1, %v173_v50 }
 0x2d5   :  { %399 = vrot.lane.b32.xlu2 %v396_v53, %s1427_s22 }
 0x32f   :  { %v400_v54 = vpop.permute.xlu2 %399 }
 0x330   :  { %v1756_v55 = vsel %vm397_vm11, %v400_v54, %v1720_v7 }
 0x331   :  { %478 = vrot.lane.b32.xlu0 %v1756_v55, %s1427_s22  ;;  %1325 = vmatmul.msk.f32.vlgmr.msra.gmra.mxu2 %vm194_vm1, %v1756_v55 }
 0x332   :  { %1326 = vmatmul.msk.f32.vlgmr.msra.gmra.mxu3 %vm194_vm1, %v1756_v55  ;;  %588 = vmatpush.msra.mxu2 %v1496_v0 }
 0x333   :  { %608 = vmatpush.msra.mxu3 %v1530_v8 }
 0x334   :  { %589 = vmatpush.msra.mxu2 %v1504_v2 }
 0x335   :  { %609 = vmatpush.msra.mxu3 %v1536_v9 }
 0x336   :  { %590 = vmatpush.msra.mxu2 %v1513_v4 }
 0x337   :  { %610 = vmatpush.msra.mxu3 %v1560_v15 }
 0x338   :  { %591 = vmatpush.msra.mxu2 %v1522_v6 }
 0x339   :  { %611 = vmatpush.msra.mxu3 %v1575_v18 }
 0x33a   :  { %592 = vmatpush.msra.mxu2 %v1544_v11 }
 0x33b   :  { %612 = vmatpush.msra.mxu3 %v1591_v21 }
 0x33c   :  { %593 = vmatpush.msra.mxu2 %v1565_v16 }
 0x33d   :  { %613 = vmatpush.msra.mxu3 %v1607_v24 }
 0x33e   :  { %594 = vmatpush.msra.mxu2 %v1581_v19 }
 0x33f   :  { %614 = vmatpush.msra.mxu3 %v1615_v25 }
 0x340   :  { %595 = vmatpush.msra.mxu2 %v1596_v22 }
 0x341   :  { %615 = vmatpush.msra.mxu3 %v1622_v27 }
 0x3a3   :  { %v479_v39 = vpop.permute.xlu0 %478 }
 0x3b4   :  { %v425_v60 = vpop.f32.mrf.mxu2 }
 0x3b5   :  { %v448_v61 = vadd.f32 %v425_v60, %v123_v57  ;;  %v445_v17 = vpop.f32.mrf.mxu3 }
 0x3b6   :  { %v468_v30 = vadd.f32 %v1703_v43, %v445_v17 }
 0x3b7   :  { %v1327_v62 = vmul.f32 -1.442695, %v448_v61 }
 0x3b9   :  { %1368 = vpow2.f32 %v1327_v62 }
 0x3bf   :  { %v1369_v63 = vpop.eup %1368 }
 0x3c0   :  { %v452_v1 = vadd.f32 1.0, %v1369_v63 }
 0x3c2   :  { %1370 = vrcp.f32 %v452_v1  ;;  %v464_v12 = vand.u32 2147483648, %v452_v1  ;;  %v462_v14 = vand.u32 2147483647, %v452_v1  ;;  %vm458_vm13 = vweird.f32 %v452_v1 }
 0x3c4   :  { %v465_v23 = vor.u32 1.1754944e-38, %v464_v12  ;;  %vm463_vm15 = vcmp.eq.f32.partialorder %v462_v14, 8.507059e+37  ;;  %v490_v12 = vld [vmem:[#allocation2 + $0x38] sm:$0xff] }
 0x3c8   :  { %v1371_v5 = vpop.eup %1370 }
 0x3c9   :  { %v454_v7 = vmul.f32 %v1371_v5, %v452_v1  ;;  %vm459_vm12 = vweird.f32 %v1371_v5 }
 0x3ca   :  { %vm460_vm14 = vmor %vm458_vm13, %vm459_vm12 }
 0x3cb   :  { %v455_v10 = vsub.f32 1.0, %v454_v7 }
 0x3cd   :  { %v456_v13 = vmul.f32 %v1371_v5, %v455_v10 }
 0x3cf   :  { %v457_v20 = vadd.f32 %v1371_v5, %v456_v13 }
 0x3d1   :  { %v461_v28 = vsel %vm460_vm14, %v1371_v5, %v457_v20  ;;  %v46_v20 = vld [vmem:[%s2056_s0 + $0x20] sm:$0xff] }
 0x3d2   :  { %v466_v31 = vsel %vm463_vm15, %v465_v23, %v461_v28  ;;  %1305 = vmatmul.msk.f32.gmra.mxu0 %vm68_vm0, %v46_v20  ;;  %1315 = vmatmul.msk.f32.gmra.mxu1 %vm68_vm0, %v46_v20 }
 0x3d3   :  { %v469_v34 = vmul.f32 %v468_v30, %v466_v31  ;;  %v472_v38 = vsub.f32 1.0, %v466_v31  ;;  %v481_v41 = vmul.f32 %v479_v39, %v466_v31 }
 0x3d5   :  { %v470_v35 = vadd.f32 %v469_v34, %v404_v33 }
 0x3d7   :  { %1372 = vtanh.f32 %v470_v35 }
 0x3dd   :  { %v1373_v36 = vpop.eup %1372 }
 0x3de   :  { %474 = vrot.lane.b32.xlu2 %v1373_v36, %s1427_s22 }
 0x438   :  { %v475_v40 = vpop.permute.xlu2 %474 }
 0x439   :  { %v477_v42 = vmul.f32 %v475_v40, %v472_v38 }
 0x43b   :  { %v482_v44 = vadd.f32 %v481_v41, %v477_v42 }
 0x43d   :  { %485 = vrot.lane.b32.xlu1 %v482_v44, %s1427_s22 }
 0x44f   :  { %v128_v37 = vpop.f32.mrf.mxu0  ;;  %v175_v39 = vpop.f32.mrf.mxu1 }
 0x450   :  { %v129_v38 = vadd.f32 %v128_v37, %v1693_v29  ;;  %v176_v40 = vadd.f32 %v175_v39, %v1696_v32 }
 0x452   :  { %203 = vst.msk [vmem:[#allocation2 + $0x48] sm:$0xff] %vm194_vm1, %v176_v40 }
 0x4af   :  { %v486_v45 = vpop.permute.xlu1 %485 }
 0x4b0   :  { %v1793_v46 = vsel %vm483_vm2, %v486_v45, %v1756_v55  ;;  %vm741_vm2 = vcmp.gt.s32.totalorder %v1717_v3, 5 }
 0x4b1   :  { %564 = vrot.lane.b32.xlu0 %v1793_v46, %s1427_s22  ;;  %1328 = vmatmul.msk.f32.vlgmr.msrb.gmra.mxu2 %vm194_vm1, %v1793_v46 }
 0x4b2   :  { %1329 = vmatmul.msk.f32.vlgmr.msrb.gmra.mxu3 %vm194_vm1, %v1793_v46  ;;  %760 = vmatpush.msrb.mxu2 %v1496_v0 }
 0x4b3   :  { %780 = vmatpush.msrb.mxu3 %v1530_v8 }
 0x4b4   :  { %761 = vmatpush.msrb.mxu2 %v1504_v2 }
 0x4b5   :  { %781 = vmatpush.msrb.mxu3 %v1536_v9 }
 0x4b6   :  { %762 = vmatpush.msrb.mxu2 %v1513_v4 }
 0x4b7   :  { %782 = vmatpush.msrb.mxu3 %v1560_v15 }
 0x4b8   :  { %763 = vmatpush.msrb.mxu2 %v1522_v6 }
 0x4b9   :  { %783 = vmatpush.msrb.mxu3 %v1575_v18 }
 0x4ba   :  { %764 = vmatpush.msrb.mxu2 %v1544_v11 }
 0x4bb   :  { %784 = vmatpush.msrb.mxu3 %v1591_v21 }
 0x4bc   :  { %765 = vmatpush.msrb.mxu2 %v1565_v16 }
 0x4bd   :  { %785 = vmatpush.msrb.mxu3 %v1607_v24 }
 0x4be   :  { %766 = vmatpush.msrb.mxu2 %v1581_v19 }
 0x4bf   :  { %786 = vmatpush.msrb.mxu3 %v1615_v25 }
 0x4c0   :  { %767 = vmatpush.msrb.mxu2 %v1596_v22 }
 0x4c1   :  { %787 = vmatpush.msrb.mxu3 %v1622_v27 }
 0x523   :  { %v565_v28 = vpop.permute.xlu0 %564 }
 0x534   :  { %v511_v51 = vpop.f32.mrf.mxu2 }
 0x535   :  { %v534_v52 = vadd.f32 %v511_v51, %v126_v48  ;;  %v531_v62 = vpop.f32.mrf.mxu3 }
 0x536   :  { %v554_v7 = vadd.f32 %v1703_v43, %v531_v62 }
 0x537   :  { %v1330_v53 = vmul.f32 -1.442695, %v534_v52 }
 0x539   :  { %1374 = vpow2.f32 %v1330_v53 }
 0x53f   :  { %v1375_v54 = vpop.eup %1374 }
 0x540   :  { %v538_v55 = vadd.f32 1.0, %v1375_v54 }
 0x542   :  { %1376 = vrcp.f32 %v538_v55  ;;  %v550_v59 = vand.u32 2147483648, %v538_v55  ;;  %v548_v61 = vand.u32 2147483647, %v538_v55  ;;  %vm544_vm4 = vweird.f32 %v538_v55 }
 0x544   :  { %v551_v1 = vor.u32 1.1754944e-38, %v550_v59  ;;  %vm549_vm6 = vcmp.eq.f32.partialorder %v548_v61, 8.507059e+37  ;;  %v576_v59 = vld [vmem:[#allocation2 + $0x48] sm:$0xff] }
 0x548   :  { %v1377_v56 = vpop.eup %1376 }
 0x549   :  { %v540_v57 = vmul.f32 %v1377_v56, %v538_v55  ;;  %vm545_vm3 = vweird.f32 %v1377_v56 }
 0x54a   :  { %vm546_vm5 = vmor %vm544_vm4, %vm545_vm3 }
 0x54b   :  { %v541_v58 = vsub.f32 1.0, %v540_v57 }
 0x54d   :  { %v542_v60 = vmul.f32 %v1377_v56, %v541_v58 }
 0x54f   :  { %v543_v63 = vadd.f32 %v1377_v56, %v542_v60 }
 0x551   :  { %v547_v5 = vsel %vm546_vm5, %v1377_v56, %v543_v63  ;;  %v47_v63 = vld [vmem:[%s2056_s0 + $0x28] sm:$0xff] }
 0x552   :  { %v552_v10 = vsel %vm549_vm6, %v551_v1, %v547_v5  ;;  %1306 = vmatmul.msk.f32.gmra.mxu0 %vm68_vm0, %v47_v63  ;;  %1316 = vmatmul.msk.f32.gmra.mxu1 %vm68_vm0, %v47_v63  ;;  %v48_v1 = vld [vmem:[%s2056_s0 + $0x30] sm:$0xff]  ;;  %v49_v5 = vld [vmem:[%s2056_s0 + $0x38] sm:$0xff] }
 0x553   :  { %v555_v13 = vmul.f32 %v554_v7, %v552_v10  ;;  %v558_v23 = vsub.f32 1.0, %v552_v10  ;;  %v567_v31 = vmul.f32 %v565_v28, %v552_v10  ;;  %v50_v7 = vld [vmem:[%s2056_s0 + $0x40] sm:$0xff] }
 0x555   :  { %v556_v14 = vadd.f32 %v555_v13, %v490_v12 }
 0x557   :  { %1378 = vtanh.f32 %v556_v14 }
 0x55a   :  { %1307 = vmatmul.msk.f32.gmra.mxu0 %vm68_vm0, %v48_v1  ;;  %1317 = vmatmul.msk.f32.gmra.mxu1 %vm68_vm0, %v48_v1 }
 0x55d   :  { %v1379_v17 = vpop.eup %1378 }
 0x55e   :  { %560 = vrot.lane.b32.xlu2 %v1379_v17, %s1427_s22 }
 0x562   :  { %1308 = vmatmul.msk.f32.gmra.mxu0 %vm68_vm0, %v49_v5  ;;  %1318 = vmatmul.msk.f32.gmra.mxu1 %vm68_vm0, %v49_v5 }
 0x56a   :  { %1309 = vmatmul.msk.f32.gmra.mxu0 %vm68_vm0, %v50_v7  ;;  %1319 = vmatmul.msk.f32.gmra.mxu1 %vm68_vm0, %v50_v7 }
 0x5b8   :  { %v561_v30 = vpop.permute.xlu2 %560 }
 0x5b9   :  { %v563_v33 = vmul.f32 %v561_v30, %v558_v23  ;;  %v51_v23 = vld [vmem:[%s2056_s0 + $0x48] sm:$0xff] }
 0x5ba   :  { %1310 = vmatmul.msk.f32.gmra.mxu0 %vm68_vm0, %v51_v23  ;;  %1320 = vmatmul.msk.f32.gmra.mxu1 %vm68_vm0, %v51_v23  ;;  %vm655_vm0 = vcmp.gt.s32.totalorder %v1717_v3, 4 }
 0x5bb   :  { %v568_v34 = vadd.f32 %v567_v31, %v563_v33 }
 0x5bd   :  { %571 = vrot.lane.b32.xlu1 %v568_v34, %s1427_s22 }
 0x5cf   :  { %v131_v28 = vpop.f32.mrf.mxu0  ;;  %v178_v30 = vpop.f32.mrf.mxu1 }
 0x5d0   :  { %v132_v31 = vadd.f32 %v131_v28, %v1693_v29  ;;  %v179_v33 = vadd.f32 %v178_v30, %v1696_v32 }
 0x5d2   :  { %205 = vst.msk [vmem:[#allocation2 + $0x58] sm:$0xff] %vm194_vm1, %v179_v33 }
 0x5d7   :  { %v134_v34 = vpop.f32.mrf.mxu0 }
 0x5d8   :  { %v1889_v37 = vadd.f32 %v134_v34, %v1693_v29 }
 0x5df   :  { %v137_v39 = vpop.f32.mrf.mxu0 }
 0x62f   :  { %v572_v35 = vpop.permute.xlu1 %571 }
 0x630   :  { %v1830_v36 = vsel %vm569_vm7, %v572_v35, %v1793_v46  ;;  %v181_v35 = vpop.f32.mrf.mxu1  ;;  %vm827_vm7 = vcmp.gt.s32.totalorder %v1717_v3, 6 }
 0x631   :  { %650 = vrot.lane.b32.xlu0 %v1830_v36, %s1427_s22  ;;  %1331 = vmatmul.msk.f32.vlgmr.msra.gmra.mxu2 %vm194_vm1, %v1830_v36 }
 0x632   :  { %1332 = vmatmul.msk.f32.vlgmr.msra.gmra.mxu3 %vm194_vm1, %v1830_v36  ;;  %932 = vmatpush.msra.mxu2 %v1496_v0 }
 0x633   :  { %952 = vmatpush.msra.mxu3 %v1530_v8 }
 0x634   :  { %933 = vmatpush.msra.mxu2 %v1504_v2 }
 0x635   :  { %953 = vmatpush.msra.mxu3 %v1536_v9 }
 0x636   :  { %934 = vmatpush.msra.mxu2 %v1513_v4 }
 0x637   :  { %954 = vmatpush.msra.mxu3 %v1560_v15 }
 0x638   :  { %935 = vmatpush.msra.mxu2 %v1522_v6  ;;  %v184_v40 = vpop.f32.mrf.mxu1 }
 0x639   :  { %955 = vmatpush.msra.mxu3 %v1575_v18 }
 0x63a   :  { %936 = vmatpush.msra.mxu2 %v1544_v11 }
 0x63b   :  { %956 = vmatpush.msra.mxu3 %v1591_v21 }
 0x63c   :  { %937 = vmatpush.msra.mxu2 %v1565_v16 }
 0x63d   :  { %957 = vmatpush.msra.mxu3 %v1607_v24 }
 0x63e   :  { %938 = vmatpush.msra.mxu2 %v1581_v19 }
 0x63f   :  { %958 = vmatpush.msra.mxu3 %v1615_v25 }
 0x640   :  { %939 = vmatpush.msra.mxu2 %v1596_v22 }
 0x641   :  { %959 = vmatpush.msra.mxu3 %v1622_v27 }
 0x6a3   :  { %v651_v12 = vpop.permute.xlu0 %650 }
 0x6b4   :  { %v597_v41 = vpop.f32.mrf.mxu2 }
 0x6b5   :  { %v620_v42 = vadd.f32 %v597_v41, %v129_v38  ;;  %v617_v53 = vpop.f32.mrf.mxu3  ;;  %v182_v38 = vadd.f32 %v181_v35, %v1696_v32  ;;  %v1894_v41 = vadd.f32 %v137_v39, %v1693_v29 }
 0x6b6   :  { %v640_v57 = vadd.f32 %v1703_v43, %v617_v53  ;;  %v662_v53 = vld [vmem:[#allocation2 + $0x58] sm:$0xff] }
 0x6b7   :  { %v1333_v44 = vmul.f32 -1.442695, %v620_v42  ;;  %207 = vst.msk [vmem:[#allocation2 + $0x68] sm:$0xff] %vm194_vm1, %v182_v38  ;;  %v185_v42 = vadd.f32 %v184_v40, %v1696_v32 }
 0x6b9   :  { %1380 = vpow2.f32 %v1333_v44  ;;  %209 = vst.msk [vmem:[#allocation2 + $0x78] sm:$0xff] %vm194_vm1, %v185_v42 }
 0x6be   :  { %v748_v39 = vld [vmem:[#allocation2 + $0x68] sm:$0xff] }
 0x6bf   :  { %v1381_v45 = vpop.eup %1380 }
 0x6c0   :  { %v624_v46 = vadd.f32 1.0, %v1381_v45 }
 0x6c2   :  { %1382 = vrcp.f32 %v624_v46  ;;  %v636_v50 = vand.u32 2147483648, %v624_v46  ;;  %v634_v52 = vand.u32 2147483647, %v624_v46  ;;  %vm630_vm9 = vweird.f32 %v624_v46 }
 0x6c4   :  { %v637_v55 = vor.u32 1.1754944e-38, %v636_v50  ;;  %vm635_vm11 = vcmp.eq.f32.partialorder %v634_v52, 8.507059e+37 }
 0x6c8   :  { %v1383_v47 = vpop.eup %1382 }
 0x6c9   :  { %v626_v48 = vmul.f32 %v1383_v47, %v624_v46  ;;  %vm631_vm8 = vweird.f32 %v1383_v47  ;;  %v140_v46 = vpop.f32.mrf.mxu0 }
 0x6ca   :  { %vm632_vm10 = vmor %vm630_vm9, %vm631_vm8 }
 0x6cb   :  { %v627_v49 = vsub.f32 1.0, %v626_v48  ;;  %v1911_v48 = vadd.f32 %v140_v46, %v1693_v29 }
 0x6cd   :  { %v628_v51 = vmul.f32 %v1383_v47, %v627_v49 }
 0x6cf   :  { %v629_v54 = vadd.f32 %v1383_v47, %v628_v51 }
 0x6d1   :  { %v633_v56 = vsel %vm632_vm10, %v1383_v47, %v629_v54  ;;  %v187_v47 = vpop.f32.mrf.mxu1 }
 0x6d2   :  { %v638_v58 = vsel %vm635_vm11, %v637_v55, %v633_v56 }
 0x6d3   :  { %v641_v60 = vmul.f32 %v640_v57, %v638_v58  ;;  %v644_v10 = vsub.f32 1.0, %v638_v58  ;;  %v653_v14 = vmul.f32 %v651_v12, %v638_v58 }
 0x6d5   :  { %v642_v61 = vadd.f32 %v641_v60, %v576_v59 }
 0x6d7   :  { %1384 = vtanh.f32 %v642_v61 }
 0x6dd   :  { %v1385_v62 = vpop.eup %1384 }
 0x6de   :  { %646 = vrot.lane.b32.xlu2 %v1385_v62, %s1427_s22 }
 0x738   :  { %v647_v13 = vpop.permute.xlu2 %646 }
 0x739   :  { %v649_v17 = vmul.f32 %v647_v13, %v644_v10 }
 0x73b   :  { %v654_v20 = vadd.f32 %v653_v14, %v649_v17 }
 0x73d   :  { %657 = vrot.lane.b32.xlu1 %v654_v20, %s1427_s22 }
 0x7af   :  { %v658_v44 = vpop.permute.xlu1 %657 }
 0x7b0   :  { %v1900_v45 = vsel %vm655_vm0, %v658_v44, %v1830_v36  ;;  %v188_v36 = vadd.f32 %v187_v47, %v1696_v32  ;;  %vm913_vm0 = vcmp.gt.s32.totalorder %v1717_v3, 7 }
 0x7b1   :  { %736 = vrot.lane.b32.xlu0 %v1900_v45, %s1427_s22  ;;  %1334 = vmatmul.msk.f32.vlgmr.msrb.gmra.mxu0 %vm194_vm1, %v1900_v45 }
 0x7b2   :  { %1335 = vmatmul.msk.f32.vlgmr.msrb.gmra.mxu1 %vm194_vm1, %v1900_v45  ;;  %1018 = vmatpush.msrb.mxu0 %v1496_v0  ;;  %211 = vst.msk [vmem:[#allocation2 + $0x88] sm:$0xff] %vm194_vm1, %v188_v36  ;;  %v143_v0 = vpop.f32.mrf.mxu0 }
 0x7b3   :  { %1038 = vmatpush.msrb.mxu1 %v1530_v8 }
 0x7b4   :  { %1019 = vmatpush.msrb.mxu0 %v1504_v2  ;;  %v190_v2 = vpop.f32.mrf.mxu1 }
 0x7b5   :  { %1039 = vmatpush.msrb.mxu1 %v1536_v9 }
 0x7b6   :  { %1020 = vmatpush.msrb.mxu0 %v1513_v4  ;;  %v1930_v4 = vadd.f32 %v143_v0, %v1693_v29 }
 0x7b7   :  { %1040 = vmatpush.msrb.mxu1 %v1560_v15 }
 0x7b8   :  { %1021 = vmatpush.msrb.mxu0 %v1522_v6  ;;  %v191_v6 = vadd.f32 %v190_v2, %v1696_v32 }
 0x7b9   :  { %1041 = vmatpush.msrb.mxu1 %v1575_v18 }
 0x7ba   :  { %1022 = vmatpush.msrb.mxu0 %v1544_v11  ;;  %213 = vst.msk [vmem:[#allocation2 + $0x98] sm:$0xff] %vm194_vm1, %v191_v6 }
 0x7bb   :  { %1042 = vmatpush.msrb.mxu1 %v1591_v21 }
 0x7bc   :  { %1023 = vmatpush.msrb.mxu0 %v1565_v16 }
 0x7bd   :  { %1043 = vmatpush.msrb.mxu1 %v1607_v24 }
 0x7be   :  { %1024 = vmatpush.msrb.mxu0 %v1581_v19 }
 0x7bf   :  { %1044 = vmatpush.msrb.mxu1 %v1615_v25 }
 0x7c0   :  { %1025 = vmatpush.msrb.mxu0 %v1596_v22 }
 0x7c1   :  { %1045 = vmatpush.msrb.mxu1 %v1622_v27 }
 0x823   :  { %v737_v57 = vpop.permute.xlu0 %736 }
 0x82e   :  { %v683_v8 = vpop.f32.mrf.mxu0 }
 0x82f   :  { %v706_v9 = vadd.f32 %v683_v8, %v132_v31  ;;  %v703_v27 = vpop.f32.mrf.mxu1 }
 0x830   :  { %v726_v50 = vadd.f32 %v1703_v43, %v703_v27 }
 0x831   :  { %v1336_v11 = vmul.f32 -1.442695, %v706_v9 }
 0x833   :  { %1386 = vpow2.f32 %v1336_v11 }
 0x839   :  { %v1387_v15 = vpop.eup %1386 }
 0x83a   :  { %v710_v16 = vadd.f32 1.0, %v1387_v15 }
 0x83c   :  { %1388 = vrcp.f32 %v710_v16  ;;  %v722_v22 = vand.u32 2147483648, %v710_v16  ;;  %v720_v25 = vand.u32 2147483647, %v710_v16  ;;  %vm716_vm13 = vweird.f32 %v710_v16 }
 0x83e   :  { %v723_v32 = vor.u32 1.1754944e-38, %v722_v22  ;;  %vm721_vm15 = vcmp.eq.f32.partialorder %v720_v25, 8.507059e+37 }
 0x842   :  { %v1389_v18 = vpop.eup %1388 }
 0x843   :  { %v712_v19 = vmul.f32 %v1389_v18, %v710_v16  ;;  %vm717_vm12 = vweird.f32 %v1389_v18 }
 0x844   :  { %vm718_vm14 = vmor %vm716_vm13, %vm717_vm12 }
 0x845   :  { %v713_v21 = vsub.f32 1.0, %v712_v19 }
 0x847   :  { %v714_v24 = vmul.f32 %v1389_v18, %v713_v21 }
 0x849   :  { %v715_v29 = vadd.f32 %v1389_v18, %v714_v24 }
 0x84b   :  { %v719_v49 = vsel %vm718_vm14, %v1389_v18, %v715_v29 }
 0x84c   :  { %v724_v51 = vsel %vm721_vm15, %v723_v32, %v719_v49 }
 0x84d   :  { %v727_v52 = vmul.f32 %v726_v50, %v724_v51  ;;  %v730_v56 = vsub.f32 1.0, %v724_v51  ;;  %v739_v59 = vmul.f32 %v737_v57, %v724_v51 }
 0x84f   :  { %v728_v54 = vadd.f32 %v727_v52, %v662_v53  ;;  %v834_v52 = vld [vmem:[#allocation2 + $0x78] sm:$0xff] }
 0x851   :  { %1390 = vtanh.f32 %v728_v54 }
 0x857   :  { %v1391_v55 = vpop.eup %1390 }
 0x858   :  { %732 = vrot.lane.b32.xlu2 %v1391_v55, %s1427_s22 }
 0x8b2   :  { %v733_v58 = vpop.permute.xlu2 %732 }
 0x8b3   :  { %v735_v60 = vmul.f32 %v733_v58, %v730_v56 }
 0x8b5   :  { %v740_v61 = vadd.f32 %v739_v59, %v735_v60 }
 0x8b7   :  { %743 = vrot.lane.b32.xlu1 %v740_v61, %s1427_s22 }
 0x929   :  { %v744_v62 = vpop.permute.xlu1 %743 }
 0x92a   :  { %v746_v63 = vsel %vm741_vm2, %v744_v62, %v1900_v45  ;;  %vm999_vm2 = vcmp.gt.s32.totalorder %v1717_v3, 8 }
 0x92b   :  { %822 = vrot.lane.b32.xlu0 %v746_v63, %s1427_s22  ;;  %1337 = vmatmul.msk.f32.vlgmr.msrb.gmra.mxu2 %vm194_vm1, %v746_v63 }
 0x92c   :  { %1338 = vmatmul.msk.f32.vlgmr.msrb.gmra.mxu3 %vm194_vm1, %v746_v63 }
 0x99d   :  { %v823_v45 = vpop.permute.xlu0 %822 }
 0x9ae   :  { %v769_v1 = vpop.f32.mrf.mxu2 }
 0x9af   :  { %v792_v5 = vadd.f32 %v769_v1, %v1889_v37  ;;  %v789_v30 = vpop.f32.mrf.mxu3 }
 0x9b0   :  { %v812_v35 = vadd.f32 %v1703_v43, %v789_v30 }
 0x9b1   :  { %v1339_v7 = vmul.f32 -1.442695, %v792_v5 }
 0x9b3   :  { %1392 = vpow2.f32 %v1339_v7 }
 0x9b9   :  { %v1393_v10 = vpop.eup %1392 }
 0x9ba   :  { %v796_v12 = vadd.f32 1.0, %v1393_v10 }
 0x9bc   :  { %1394 = vrcp.f32 %v796_v12  ;;  %v808_v20 = vand.u32 2147483648, %v796_v12  ;;  %v806_v28 = vand.u32 2147483647, %v796_v12  ;;  %vm802_vm4 = vweird.f32 %v796_v12 }
 0x9be   :  { %v809_v33 = vor.u32 1.1754944e-38, %v808_v20  ;;  %vm807_vm6 = vcmp.eq.f32.partialorder %v806_v28, 8.507059e+37 }
 0x9c2   :  { %v1395_v13 = vpop.eup %1394 }
 0x9c3   :  { %v798_v14 = vmul.f32 %v1395_v13, %v796_v12  ;;  %vm803_vm3 = vweird.f32 %v1395_v13 }
 0x9c4   :  { %vm804_vm5 = vmor %vm802_vm4, %vm803_vm3 }
 0x9c5   :  { %v799_v17 = vsub.f32 1.0, %v798_v14 }
 0x9c7   :  { %v800_v23 = vmul.f32 %v1395_v13, %v799_v17 }
 0x9c9   :  { %v801_v31 = vadd.f32 %v1395_v13, %v800_v23 }
 0x9cb   :  { %v805_v34 = vsel %vm804_vm5, %v1395_v13, %v801_v31 }
 0x9cc   :  { %v810_v37 = vsel %vm807_vm6, %v809_v33, %v805_v34 }
 0x9cd   :  { %v813_v38 = vmul.f32 %v812_v35, %v810_v37  ;;  %v816_v44 = vsub.f32 1.0, %v810_v37  ;;  %v825_v47 = vmul.f32 %v823_v45, %v810_v37  ;;  %v920_v37 = vld [vmem:[#allocation2 + $0x88] sm:$0xff] }
 0x9cf   :  { %v814_v40 = vadd.f32 %v813_v38, %v748_v39 }
 0x9d1   :  { %1396 = vtanh.f32 %v814_v40 }
 0x9d7   :  { %v1397_v42 = vpop.eup %1396 }
 0x9d8   :  { %818 = vrot.lane.b32.xlu2 %v1397_v42, %s1427_s22 }
 0xa32   :  { %v819_v46 = vpop.permute.xlu2 %818 }
 0xa33   :  { %v821_v36 = vmul.f32 %v819_v46, %v816_v44 }
 0xa35   :  { %v826_v0 = vadd.f32 %v825_v47, %v821_v36 }
 0xa37   :  { %829 = vrot.lane.b32.xlu1 %v826_v0, %s1427_s22 }
 0xaa9   :  { %v830_v2 = vpop.permute.xlu1 %829 }
 0xaaa   :  { %v832_v6 = vsel %vm827_vm7, %v830_v2, %v746_v63 }
 0xaab   :  { %908 = vrot.lane.b32.xlu0 %v832_v6, %s1427_s22  ;;  %1340 = vmatmul.msk.f32.vlgmr.msra.gmra.mxu0 %vm194_vm1, %v832_v6 }
 0xaac   :  { %1341 = vmatmul.msk.f32.vlgmr.msra.gmra.mxu1 %vm194_vm1, %v832_v6 }
 0xb1d   :  { %v909_v56 = vpop.permute.xlu0 %908 }
 0xb28   :  { %v855_v8 = vpop.f32.mrf.mxu0 }
 0xb29   :  { %v878_v9 = vadd.f32 %v855_v8, %v1894_v41  ;;  %v875_v27 = vpop.f32.mrf.mxu1 }
 0xb2a   :  { %v898_v41 = vadd.f32 %v1703_v43, %v875_v27 }
 0xb2b   :  { %v1342_v11 = vmul.f32 -1.442695, %v878_v9 }
 0xb2d   :  { %1398 = vpow2.f32 %v1342_v11 }
 0xb33   :  { %v1399_v15 = vpop.eup %1398 }
 0xb34   :  { %v882_v16 = vadd.f32 1.0, %v1399_v15 }
 0xb36   :  { %1400 = vrcp.f32 %v882_v16  ;;  %v894_v22 = vand.u32 2147483648, %v882_v16  ;;  %v892_v25 = vand.u32 2147483647, %v882_v16  ;;  %vm888_vm9 = vweird.f32 %v882_v16 }
 0xb38   :  { %v895_v32 = vor.u32 1.1754944e-38, %v894_v22  ;;  %vm893_vm11 = vcmp.eq.f32.partialorder %v892_v25, 8.507059e+37 }
 0xb3c   :  { %v1401_v18 = vpop.eup %1400 }
 0xb3d   :  { %v884_v19 = vmul.f32 %v1401_v18, %v882_v16  ;;  %vm889_vm8 = vweird.f32 %v1401_v18 }
 0xb3e   :  { %vm890_vm10 = vmor %vm888_vm9, %vm889_vm8  ;;  %vm1129_vm9 = vcmask 261120  }
 0xb3f   :  { %v885_v21 = vsub.f32 1.0, %v884_v19 }
 0xb41   :  { %v886_v24 = vmul.f32 %v1401_v18, %v885_v21 }
 0xb43   :  { %v887_v29 = vadd.f32 %v1401_v18, %v886_v24 }
 0xb45   :  { %v891_v49 = vsel %vm890_vm10, %v1401_v18, %v887_v29 }
 0xb46   :  { %v896_v50 = vsel %vm893_vm11, %v895_v32, %v891_v49  ;;  %v1006_v49 = vld [vmem:[#allocation2 + $0x98] sm:$0xff] }
 0xb47   :  { %v899_v51 = vmul.f32 %v898_v41, %v896_v50  ;;  %v902_v55 = vsub.f32 1.0, %v896_v50  ;;  %v911_v58 = vmul.f32 %v909_v56, %v896_v50  ;;  %v1098_v56 = vld [vmem:[%s2060_s6 + $0x10] sm:$0xff] }
 0xb49   :  { %v900_v53 = vadd.f32 %v899_v51, %v834_v52  ;;  %v1103_v51 = vld [vmem:[%s2060_s6 + $0x38] sm:$0xff]  ;;  %v1102_v52 = vld [vmem:[%s2060_s6 + $0x30] sm:$0xff] }
 0xb4a   :  { %1116 = vmatpush.msrb.mxu2 %v1103_v51 }
 0xb4b   :  { %1402 = vtanh.f32 %v900_v53  ;;  %v1101_v53 = vld [vmem:[%s2060_s6 + $0x28] sm:$0xff] }
 0xb4c   :  { %1117 = vmatpush.msrb.mxu2 %v1102_v52 }
 0xb4e   :  { %1118 = vmatpush.msrb.mxu2 %v1101_v53 }
 0xb51   :  { %v1403_v54 = vpop.eup %1402 }
 0xb52   :  { %904 = vrot.lane.b32.xlu2 %v1403_v54, %s1427_s22  ;;  %v1100_v54 = vld [vmem:[%s2060_s6 + $0x20] sm:$0xff] }
 0xb53   :  { %1119 = vmatpush.msrb.mxu2 %v1100_v54 }
 0xbac   :  { %v905_v57 = vpop.permute.xlu2 %904 }
 0xbad   :  { %v907_v59 = vmul.f32 %v905_v57, %v902_v55  ;;  %v1099_v55 = vld [vmem:[%s2060_s6 + $0x18] sm:$0xff]  ;;  %v1097_v57 = vld [vmem:[%s2060_s6 + $0x8] sm:$0xff] }
 0xbae   :  { %1120 = vmatpush.msrb.mxu2 %v1099_v55 }
 0xbaf   :  { %v912_v60 = vadd.f32 %v911_v58, %v907_v59 }
 0xbb0   :  { %1121 = vmatpush.msrb.mxu2 %v1098_v56 }
 0xbb1   :  { %915 = vrot.lane.b32.xlu1 %v912_v60, %s1427_s22 }
 0xbb2   :  { %1122 = vmatpush.msrb.mxu2 %v1097_v57 }
 0xc23   :  { %v916_v61 = vpop.permute.xlu1 %915 }
 0xc24   :  { %v918_v62 = vsel %vm913_vm0, %v916_v61, %v832_v6 }
 0xc25   :  { %994 = vrot.lane.b32.xlu0 %v918_v62, %s1427_s22  ;;  %1343 = vmatmul.msk.f32.vlgmr.msra.gmra.mxu2 %vm194_vm1, %v918_v62 }
 0xc26   :  { %1344 = vmatmul.msk.f32.vlgmr.msra.gmra.mxu3 %vm194_vm1, %v918_v62 }
 0xc97   :  { %v995_v42 = vpop.permute.xlu0 %994 }
 0xca8   :  { %v941_v63 = vpop.f32.mrf.mxu2 }
 0xca9   :  { %v964_v1 = vadd.f32 %v941_v63, %v1911_v48  ;;  %v961_v28 = vpop.f32.mrf.mxu3 }
 0xcaa   :  { %v984_v48 = vadd.f32 %v1703_v43, %v961_v28 }
 0xcab   :  { %v1345_v5 = vmul.f32 -1.442695, %v964_v1  ;;  %v1096_v1 = vld [vmem:[%s2060_s6] sm:$0xff] }
 0xcac   :  { %1123 = vmatpush.msrb.mxu2 %v1096_v1 }
 0xcad   :  { %1404 = vpow2.f32 %v1345_v5  ;;  %v1425_v5 = vld [vmem:[%s2059_s1] sm:$0xff] }
 0xcae   :  { %vm1085_vm7 = vcmp.gt.s32.totalorder %v1425_v5, 9  ;;  %v1233_v5 = vld [vmem:[%s2063_s10 + $0x10] sm:$0xff] }
 0xcb3   :  { %v1405_v7 = vpop.eup %1404 }
 0xcb4   :  { %v968_v10 = vadd.f32 1.0, %v1405_v7 }
 0xcb6   :  { %1406 = vrcp.f32 %v968_v10  ;;  %v980_v17 = vand.u32 2147483648, %v968_v10  ;;  %v978_v23 = vand.u32 2147483647, %v968_v10  ;;  %vm974_vm13 = vweird.f32 %v968_v10 }
 0xcb8   :  { %v981_v31 = vor.u32 1.1754944e-38, %v980_v17  ;;  %vm979_vm15 = vcmp.eq.f32.partialorder %v978_v23, 8.507059e+37 }
 0xcbc   :  { %v1407_v12 = vpop.eup %1406 }
 0xcbd   :  { %v970_v13 = vmul.f32 %v1407_v12, %v968_v10  ;;  %vm975_vm12 = vweird.f32 %v1407_v12 }
 0xcbe   :  { %vm976_vm14 = vmor %vm974_vm13, %vm975_vm12 }
 0xcbf   :  { %v971_v14 = vsub.f32 1.0, %v970_v13 }
 0xcc1   :  { %v972_v20 = vmul.f32 %v1407_v12, %v971_v14 }
 0xcc3   :  { %v973_v30 = vadd.f32 %v1407_v12, %v972_v20 }
 0xcc5   :  { %v977_v33 = vsel %vm976_vm14, %v1407_v12, %v973_v30  ;;  %v1091_v12 = vlaneseq }
 0xcc6   :  { %v982_v34 = vsel %vm979_vm15, %v981_v31, %v977_v33 }
 0xcc7   :  { %v985_v35 = vmul.f32 %v984_v48, %v982_v34  ;;  %v988_v40 = vsub.f32 1.0, %v982_v34  ;;  %v997_v45 = vmul.f32 %v995_v42, %v982_v34  ;;  %v1092_v13 = vshrl.u32 %v1091_v12, 7 }
 0xcc9   :  { %v986_v38 = vadd.f32 %v985_v35, %v920_v37  ;;  %vm1093_vm8 = vcmp.lt.s32.totalorder %v1092_v13, 4  ;;  %v1231_v13 = vld [vmem:[%s2063_s10] sm:$0xff] }
 0xcca   :  { %v2001_v14 = vsel %vm1093_vm8, 1.0, %v1426_v26 }
 0xccb   :  { %1408 = vtanh.f32 %v986_v38 }
 0xcd1   :  { %v1409_v39 = vpop.eup %1408 }
 0xcd2   :  { %990 = vrot.lane.b32.xlu2 %v1409_v39, %s1427_s22 }
 0xd2c   :  { %v991_v44 = vpop.permute.xlu2 %990 }
 0xd2d   :  { %v993_v46 = vmul.f32 %v991_v44, %v988_v40  ;;  %v1169_v44 = vld [vmem:[%s2061_s8 + $0x18] sm:$0xff] }
 0xd2e   :  { %1186 = vmatpush.msrb.mxu3 %v1169_v44 }
 0xd2f   :  { %v998_v47 = vadd.f32 %v997_v45, %v993_v46  ;;  %v1168_v46 = vld [vmem:[%s2061_s8 + $0x10] sm:$0xff] }
 0xd30   :  { %1187 = vmatpush.msrb.mxu3 %v1168_v46 }
 0xd31   :  { %1001 = vrot.lane.b32.xlu1 %v998_v47, %s1427_s22 }
 0xda3   :  { %v1002_v36 = vpop.permute.xlu1 %1001 }
 0xda4   :  { %v1004_v43 = vsel %vm999_vm2, %v1002_v36, %v918_v62  ;;  %v1167_v36 = vld [vmem:[%s2061_s8 + $0x8] sm:$0xff] }
 0xda5   :  { %1080 = vrot.lane.b32.xlu0 %v1004_v43, %s1427_s22  ;;  %1346 = vmatmul.msk.f32.vlgmr.msrb.gmra.mxu0 %vm194_vm1, %v1004_v43 }
 0xda6   :  { %1347 = vmatmul.msk.f32.vlgmr.msrb.gmra.mxu1 %vm194_vm1, %v1004_v43  ;;  %1188 = vmatpush.msrb.mxu3 %v1167_v36 }
 0xe17   :  { %v1081_v59 = vpop.permute.xlu0 %1080 }
 0xe22   :  { %v1027_v0 = vpop.f32.mrf.mxu0 }
 0xe23   :  { %v1050_v2 = vadd.f32 %v1027_v0, %v1930_v4  ;;  %v1047_v21 = vpop.f32.mrf.mxu1  ;;  %v1424_v4 = vld [vmem:[%s2057_s4] ss:$0 sm:$0xff] }
 0xe24   :  { %v1070_v27 = vadd.f32 %v1424_v4, %v1047_v21  ;;  %v1166_v0 = vld [vmem:[%s2061_s8] sm:$0xff] }
 0xe25   :  { %v1348_v6 = vmul.f32 -1.442695, %v1050_v2  ;;  %1189 = vmatpush.msrb.mxu3 %v1166_v0 }
 0xe27   :  { %1410 = vpow2.f32 %v1348_v6 }
 0xe2d   :  { %v1411_v8 = vpop.eup %1410 }
 0xe2e   :  { %v1054_v9 = vadd.f32 1.0, %v1411_v8 }
 0xe30   :  { %1412 = vrcp.f32 %v1054_v9  ;;  %v1066_v3 = vand.u32 2147483648, %v1054_v9  ;;  %v1064_v19 = vand.u32 2147483647, %v1054_v9  ;;  %vm1060_vm4 = vweird.f32 %v1054_v9 }
 0xe32   :  { %v1067_v24 = vor.u32 1.1754944e-38, %v1066_v3  ;;  %vm1065_vm6 = vcmp.eq.f32.partialorder %v1064_v19, 8.507059e+37  ;;  %v1104_v3 = vld [vmem:[%s2062_s7] sm:$0x3] }
 0xe33   :  { %v1161_v21 = vperm.slane %v1104_v3, 0 }
 0xe36   :  { %v1413_v11 = vpop.eup %1412 }
 0xe37   :  { %v1056_v15 = vmul.f32 %v1413_v11, %v1054_v9  ;;  %vm1061_vm3 = vweird.f32 %v1413_v11 }
 0xe38   :  { %vm1062_vm5 = vmor %vm1060_vm4, %vm1061_vm3 }
 0xe39   :  { %v1057_v16 = vsub.f32 1.0, %v1056_v15 }
 0xe3b   :  { %v1058_v18 = vmul.f32 %v1413_v11, %v1057_v16 }
 0xe3d   :  { %v1059_v22 = vadd.f32 %v1413_v11, %v1058_v18 }
 0xe3f   :  { %v1063_v25 = vsel %vm1062_vm5, %v1413_v11, %v1059_v22 }
 0xe40   :  { %v1068_v29 = vsel %vm1065_vm6, %v1067_v24, %v1063_v25  ;;  %v1163_v25 = vperm.slane %v1104_v3, 1 }
 0xe41   :  { %v1071_v32 = vmul.f32 %v1070_v27, %v1068_v29  ;;  %v1074_v58 = vsub.f32 1.0, %v1068_v29  ;;  %v1083_v61 = vmul.f32 %v1081_v59, %v1068_v29 }
 0xe43   :  { %v1072_v41 = vadd.f32 %v1071_v32, %v1006_v49 }
 0xe45   :  { %1414 = vtanh.f32 %v1072_v41 }
 0xe4b   :  { %v1415_v50 = vpop.eup %1414 }
 0xe4c   :  { %1076 = vrot.lane.b32.xlu2 %v1415_v50, %s1427_s22 }
 0xea6   :  { %v1077_v60 = vpop.permute.xlu2 %1076 }
 0xea7   :  { %v1079_v62 = vmul.f32 %v1077_v60, %v1074_v58 }
 0xea9   :  { %v1084_v63 = vadd.f32 %v1083_v61, %v1079_v62 }
 0xeab   :  { %1087 = vrot.lane.b32.xlu1 %v1084_v63, %s1427_s22  ;;  %v1234_v63 = vld [vmem:[%s2063_s10 + $0x18] sm:$0xff] }
 0xeac   :  { %1251 = vmatpush.msra.mxu3 %v1234_v63 }
 0xeae   :  { %1252 = vmatpush.msra.mxu3 %v1233_v5 }
 0xf1d   :  { %v1088_v7 = vpop.permute.xlu1 %1087 }
 0xf1e   :  { %v1090_v10 = vsel %vm1085_vm7, %v1088_v7, %v1004_v43 }
 0xf1f   :  { %1350 = vmatmul.msk.f32.vlgmr.msrb.gmra.mxu2 %vm194_vm1, %v1090_v10  ;;  %v1232_v10 = vld [vmem:[%s2063_s10 + $0x8] sm:$0xff] }
 0xf20   :  { %1253 = vmatpush.msra.mxu3 %v1232_v10 }
 0xf22   :  { %1254 = vmatpush.msra.mxu3 %v1231_v13 }
 0xfa2   :  { %v1125_v17 = vpop.f32.mrf.mxu2 }
 0xfa3   :  { %v1128_v20 = vmul.f32 %v2001_v14, %v1125_v17 }
 0xfa5   :  { %v1130_v23 = vsel %vm1129_vm9, %v1128_v20, 0.0 }
 0xfa6   :  { %v1131_v28 = vrot.slane %v1130_v23, 4 }
 0xfa8   :  { %v1132_v30 = vadd.f32 %v1131_v28, %v1130_v23 }
 0xfaa   :  { %v1133_v31 = vrot.slane %v1132_v30, 2 }
 0xfac   :  { %v1134_v33 = vadd.f32 %v1133_v31, %v1132_v30 }
 0xfae   :  { %v1135_v48 = vrot.slane %v1134_v33, 1 }
 0xfb0   :  { %v1136_v34 = vadd.f32 %v1135_v48, %v1134_v33  ;;  %v1170_v48 = vld [vmem:[%s2064_s9] sm:$0x3] }
 0xfb2   :  { %v1137_v35 = vmul.f32 0.25, %v1136_v34 }
 0xfb4   :  { %v1138_v37 = vsub.f32 %v1125_v17, %v1137_v35 }
 0xfb6   :  { %v1139_v38 = vmul.f32 %v2001_v14, %v1138_v37 }
 0xfb8   :  { %v1140_v39 = vmul.f32 %v1139_v38, %v1139_v38 }
 0xfba   :  { %v1141_v26 = vsel %vm1129_vm9, %v1140_v39, 0.0 }
 0xfbb   :  { %v1142_v40 = vrot.slane %v1141_v26, 4 }
 0xfbd   :  { %v1143_v42 = vadd.f32 %v1142_v40, %v1141_v26  ;;  %v1228_v26 = vperm.slane %v1170_v48, 1 }
 0xfbf   :  { %v1144_v45 = vrot.slane %v1143_v42, 2 }
 0xfc1   :  { %v1145_v47 = vadd.f32 %v1144_v45, %v1143_v42 }
 0xfc3   :  { %v1146_v43 = vrot.slane %v1145_v47, 1 }
 0xfc5   :  { %v1147_v2 = vadd.f32 %v1146_v43, %v1145_v47 }
 0xfc7   :  { %v1148_v6 = vmul.f32 0.25, %v1147_v2 }
 0xfc9   :  { %v1149_v8 = vadd.f32 1e-05, %v1148_v6 }
 0xfcb   :  { %1416 = vrsqrt.f32 %v1149_v8  ;;  %vm1156_vm10 = vweird.f32 %v1149_v8 }
 0xfd1   :  { %v1417_v9 = vpop.eup %1416 }
 0xfd2   :  { %v1151_v11 = vmul.f32 %v1417_v9, %v1149_v8  ;;  %vm1157_vm1 = vweird.f32 %v1417_v9 }
 0xfd3   :  { %vm1158_vm11 = vmor %vm1156_vm10, %vm1157_vm1 }
 0xfd4   :  { %v1152_v15 = vmul.f32 %v1417_v9, %v1151_v11 }
 0xfd6   :  { %v1153_v16 = vmul.f32 0.5, %v1152_v15 }
 0xfd8   :  { %v1154_v18 = vsub.f32 1.5, %v1153_v16 }
 0xfda   :  { %v1155_v19 = vmul.f32 %v1417_v9, %v1154_v18 }
 0xfdc   :  { %v1159_v22 = vsel %vm1158_vm11, %v1417_v9, %v1155_v19 }
 0xfdd   :  { %v1160_v24 = vmul.f32 %v1159_v22, %v1138_v37  ;;  %v1226_v37 = vperm.slane %v1170_v48, 0 }
 0xfdf   :  { %v1162_v4 = vmul.f32 %v1161_v21, %v1160_v24 }
 0xfe1   :  { %v1164_v27 = vadd.f32 %v1163_v25, %v1162_v4 }
 0xfe3   :  { %v1165_v29 = vmax.f32 %v1164_v27, 0.0 }
 0xfe5   :  { %1351 = vmatmul.msk.f32.vlgmr.msrb.gmra.mxu3 %vm1129_vm9, %v1165_v29 }
0x1068   :  { %v1191_v32 = vpop.f32.mrf.mxu3 }
0x1069   :  { %v1194_v49 = vmul.f32 %v2001_v14, %v1191_v32 }
0x106b   :  { %v1195_v41 = vsel %vm1129_vm9, %v1194_v49, 0.0 }
0x106c   :  { %v1196_v50 = vrot.slane %v1195_v41, 4 }
0x106e   :  { %v1197_v51 = vadd.f32 %v1196_v50, %v1195_v41 }
0x1070   :  { %v1198_v52 = vrot.slane %v1197_v51, 2 }
0x1072   :  { %v1199_v53 = vadd.f32 %v1198_v52, %v1197_v51 }
0x1074   :  { %v1200_v54 = vrot.slane %v1199_v53, 1 }
0x1076   :  { %v1201_v55 = vadd.f32 %v1200_v54, %v1199_v53 }
0x1078   :  { %v1202_v56 = vmul.f32 0.25, %v1201_v55 }
0x107a   :  { %v1203_v57 = vsub.f32 %v1191_v32, %v1202_v56 }
0x107c   :  { %v1204_v58 = vmul.f32 %v2001_v14, %v1203_v57 }
0x107e   :  { %v1205_v59 = vmul.f32 %v1204_v58, %v1204_v58 }
0x1080   :  { %v1206_v60 = vsel %vm1129_vm9, %v1205_v59, 0.0 }
0x1081   :  { %v1207_v61 = vrot.slane %v1206_v60, 4 }
0x1083   :  { %v1208_v62 = vadd.f32 %v1207_v61, %v1206_v60 }
0x1085   :  { %v1209_v1 = vrot.slane %v1208_v62, 2 }
0x1087   :  { %v1210_v7 = vadd.f32 %v1209_v1, %v1208_v62 }
0x1089   :  { %v1211_v12 = vrot.slane %v1210_v7, 1 }
0x108b   :  { %v1212_v17 = vadd.f32 %v1211_v12, %v1210_v7 }
0x108d   :  { %v1213_v20 = vmul.f32 0.25, %v1212_v17 }
0x108f   :  { %v1214_v23 = vadd.f32 1e-05, %v1213_v20 }
0x1091   :  { %1418 = vrsqrt.f32 %v1214_v23  ;;  %vm1221_vm12 = vweird.f32 %v1214_v23 }
0x1097   :  { %v1419_v28 = vpop.eup %1418 }
0x1098   :  { %v1216_v30 = vmul.f32 %v1419_v28, %v1214_v23  ;;  %vm1222_vm0 = vweird.f32 %v1419_v28 }
0x1099   :  { %vm1223_vm13 = vmor %vm1221_vm12, %vm1222_vm0 }
0x109a   :  { %v1217_v31 = vmul.f32 %v1419_v28, %v1216_v30 }
0x109c   :  { %v1218_v33 = vmul.f32 0.5, %v1217_v31 }
0x109e   :  { %v1219_v34 = vsub.f32 1.5, %v1218_v33 }
0x10a0   :  { %v1220_v35 = vmul.f32 %v1419_v28, %v1219_v34 }
0x10a2   :  { %v1224_v38 = vsel %vm1223_vm13, %v1419_v28, %v1220_v35 }
0x10a3   :  { %v1225_v39 = vmul.f32 %v1224_v38, %v1203_v57 }
0x10a5   :  { %v1227_v40 = vmul.f32 %v1226_v37, %v1225_v39 }
0x10a7   :  { %v1229_v42 = vadd.f32 %v1228_v26, %v1227_v40 }
0x10a9   :  { %v1230_v44 = vmax.f32 %v1229_v42, 0.0 }
0x10ab   :  { %1352 = vmatmul.msk.f32.vlgmr.msra.gmra.mxu3 %vm1129_vm9, %v1230_v44 }
0x112e   :  { %v1256_v45 = vpop.f32.mrf.mxu3 }
0x112f   :  { %v1259_v46 = vmul.f32 %v2001_v14, %v1256_v45 }
0x1131   :  { %v1260_v47 = vsel %vm1129_vm9, %v1259_v46, 0.0 }
0x1132   :  { %v1261_v36 = vrot.slane %v1260_v47, 4 }
0x1134   :  { %v1262_v43 = vadd.f32 %v1261_v36, %v1260_v47 }
0x1136   :  { %v1263_v0 = vrot.slane %v1262_v43, 2 }
0x1138   :  { %v1264_v2 = vadd.f32 %v1263_v0, %v1262_v43 }
0x113a   :  { %v1265_v6 = vrot.slane %v1264_v2, 1 }
0x113c   :  { %v1266_v8 = vadd.f32 %v1265_v6, %v1264_v2 }
0x113e   :  { %v1267_v9 = vmul.f32 0.25, %v1266_v8 }
0x1140   :  { %v1268_v11 = vsub.f32 %v1256_v45, %v1267_v9 }
0x1142   :  { %v1269_v15 = vmul.f32 %v2001_v14, %v1268_v11  ;;  %v1235_v14 = vld [vmem:[%s2065_s11] sm:$0x3] }
0x1143   :  { %v1291_v52 = vperm.slane %v1235_v14, 0  ;;  %v1293_v55 = vperm.slane %v1235_v14, 1 }
0x1144   :  { %v1270_v16 = vmul.f32 %v1269_v15, %v1269_v15 }
0x1146   :  { %v1271_v3 = vsel %vm1129_vm9, %v1270_v16, 0.0 }
0x1147   :  { %v1272_v18 = vrot.slane %v1271_v3, 4 }
0x1149   :  { %v1273_v19 = vadd.f32 %v1272_v18, %v1271_v3 }
0x114b   :  { %v1274_v21 = vrot.slane %v1273_v19, 2 }
0x114d   :  { %v1275_v22 = vadd.f32 %v1274_v21, %v1273_v19 }
0x114f   :  { %v1276_v24 = vrot.slane %v1275_v22, 1 }
0x1151   :  { %v1277_v25 = vadd.f32 %v1276_v24, %v1275_v22 }
0x1153   :  { %v1278_v4 = vmul.f32 0.25, %v1277_v25 }
0x1155   :  { %v1279_v27 = vadd.f32 1e-05, %v1278_v4 }
0x1157   :  { %1420 = vrsqrt.f32 %v1279_v27  ;;  %vm1286_vm15 = vweird.f32 %v1279_v27 }
0x115d   :  { %v1421_v29 = vpop.eup %1420 }
0x115e   :  { %v1281_v32 = vmul.f32 %v1421_v29, %v1279_v27  ;;  %vm1287_vm14 = vweird.f32 %v1421_v29 }
0x115f   :  { %vm1288_vm2 = vmor %vm1286_vm15, %vm1287_vm14 }
0x1160   :  { %v1282_v49 = vmul.f32 %v1421_v29, %v1281_v32 }
0x1162   :  { %v1283_v41 = vmul.f32 0.5, %v1282_v49 }
0x1164   :  { %v1284_v50 = vsub.f32 1.5, %v1283_v41 }
0x1166   :  { %v1285_v51 = vmul.f32 %v1421_v29, %v1284_v50 }
0x1168   :  { %v1289_v53 = vsel %vm1288_vm2, %v1421_v29, %v1285_v51 }
0x1169   :  { %v1290_v54 = vmul.f32 %v1289_v53, %v1268_v11 }
0x116b   :  { %v1292_v56 = vmul.f32 %v1291_v52, %v1290_v54 }
0x116d   :  { %v1294_v57 = vadd.f32 %v1293_v55, %v1292_v56 }
0x116f   :  { %1422 = vtanh.f32 %v1294_v57 }
0x1175   :  { %v1423_v58 = vpop.eup %1422 }
0x1176   :  { %1296 = vst.msk [vmem:[%s2066_s12] sm:$0xff] %vm1129_vm9, %v1423_v58 }

</bundles_post_ra>
